<compile_context>
chip_gen: v5e
topology: v5e:2x2
jax: 0.10.0
libtpu: 0.0.40
codegen_flags: <defaults>
</compile_context>

<pallas_src>
import jax
import jax.numpy as jnp
from jax.experimental import pallas as pl
from jax.experimental.pallas import tpu as pltpu

VOCAB = 100            # len(WordLib) stand-in
VOCAB_PAD = 128        # vocab padded to one 128-lane tile for the one-hot matmul
EMBED = 64             # self.embedsize
HIDDEN = 64            # self.hiddensize
HIDDEN_PAD = 128       # hidden padded so each gate (r,z,n) owns a full 128-lane tile
OUT = 7                # self.outsize
OUT_PAD = 128          # classifier output padded lane-dense
SEQ = 8                # Set.textMaxLen stand-in
BATCH = 16             # batch size (2 blocks of 8 -> feeds both v7x TensorCores)
B_BLK = 8              # per-grid-step batch block (sublane-aligned)

RRELU_SLOPE = (1.0 / 8.0 + 1.0 / 3.0) / 2.0   # eval-mode RReLU negative slope
NEG_BIG = -1.0e30                             # mask value for padded logit lanes


def gru_classifier_kernel(tok_ref, embed_ref, wih_ref, whh_ref, bif_ref, bhn_ref,
                          wout_ref, bout_ref, out_ref, gi_ref):
    """Fused embed-gather + GRU recurrence + RReLU + Linear + Softmax, VMEM-resident.

    tok_ref  : [T, B, 1]    int32 time-major token ids for this batch block
    embed_ref: [VP, E]      bf16 embedding table (vocab zero-padded to VP=128)
    wih_ref  : [E, 3*HP]    bf16 input->gates weight, gate blocks (r,z,n) each HP lanes
    whh_ref  : [HP, 3*HP]   bf16 hidden->gates weight, same padded layout
    bif_ref  : [1, 3*HP]    f32 folded bias [bih_r+bhh_r, bih_z+bhh_z, bih_n]
    bhn_ref  : [1, HP]      f32 bhh_n (added inside r*(...))
    wout_ref : [T*HP, OUTP] bf16 classifier weight, rows t*HP + h (padded rows/cols zero)
    bout_ref : [1, OUTP]    f32 classifier bias (padded cols zero)
    out_ref  : [B, OUTP]    f32 softmax probabilities (padded lanes exactly 0)
    gi_ref   : [T*B, 3*HP]  f32 VMEM scratch for the hoisted input->gates projection
    """
    T, B, _ = tok_ref.shape
    VP = embed_ref.shape[0]
    HP = whh_ref.shape[0]
    OUTP = out_ref.shape[1]
    TB = T * B

    # (1) In-kernel embedding gather as a one-hot MXU matmul (no HBM round trip for x).
    iota_v = jax.lax.broadcasted_iota(jnp.int32, (T, B, VP), 2)
    one_hot = (iota_v == tok_ref[...]).astype(jnp.float32)        # [T, B, VP]
    one_hot = one_hot.reshape(TB, VP).astype(jnp.bfloat16)        # layout-preserving merge
    x = jnp.dot(one_hot, embed_ref[...],
                preferred_element_type=jnp.float32)               # [T*B, E] f32 (exact gather)

    # (2) Hoisted input->gates projection for all steps at once, staged to VMEM scratch
    #     (keeps ~24 vregs of gi_all off the register file during the serial recurrence).
    gi_ref[...] = jnp.dot(x.astype(jnp.bfloat16), wih_ref[...],
                          preferred_element_type=jnp.float32) + bif_ref[...]   # [T*B, 3HP]

    bhn = jnp.broadcast_to(bhn_ref[...], (B, HP))                 # hoisted broadcast

    h = jnp.zeros((B, HP), jnp.float32)
    acts = []
    # (3) Statically unrolled recurrence (T fixed); every slice is static & lane-aligned.
    for t in range(T):
        gi = gi_ref[t * B:(t + 1) * B, :]                                     # [B, 3HP]
        gh = jnp.dot(h.astype(jnp.bfloat16), whh_ref[...],
                     preferred_element_type=jnp.float32)                      # [B, 3HP]
        # One fused sigmoid over the r|z halves (halves EUP elements on the serial path).
        rz = jax.nn.sigmoid(gi[:, :2 * HP] + gh[:, :2 * HP])                  # [B, 2HP]
        r = rz[:, :HP]
        z = rz[:, HP:]
        n = jnp.tanh(gi[:, 2 * HP:] + r * (gh[:, 2 * HP:] + bhn))
        h = n + z * (h - n)                                                   # == (1-z)*n + z*h
        # RReLU (eval mode) on this step's output; padded lanes stay exactly 0.
        a = jnp.where(h >= 0, h, h * RRELU_SLOPE)
        acts.append(a.astype(jnp.bfloat16))

    # (4) Single lane-dense classifier matmul, off the recurrence's critical path.
    flat = jnp.concatenate(acts, axis=1)                                      # [B, T*HP] bf16
    logits = jnp.dot(flat, wout_ref[...],
                     preferred_element_type=jnp.float32) + bout_ref[...]      # [B, OUTP] f32

    # Mask the padded logit lanes so they cannot inflate the softmax denominator.
    lane = jax.lax.broadcasted_iota(jnp.int32, (B, OUTP), 1)
    logits = jnp.where(lane < OUT, logits, NEG_BIG)

    # Softmax over dim=1 (max-subtracted, exact divide).
    m = jnp.max(logits, axis=1, keepdims=True)
    e = jnp.exp(logits - m)
    out_ref[...] = e / jnp.sum(e, axis=1, keepdims=True)


def _pad_lane(x, width):
    """Zero-pad the last dim up to `width`."""
    return jnp.pad(x, [(0, 0)] * (x.ndim - 1) + [(0, width - x.shape[-1])])


def _pad_gate_cols(w):
    """[rows, 3H] with gate blocks (r,z,n) -> [rows, 3*HP], each gate padded to HP lanes."""
    r = w[:, 0:HIDDEN]
    z = w[:, HIDDEN:2 * HIDDEN]
    n = w[:, 2 * HIDDEN:3 * HIDDEN]
    return jnp.concatenate([_pad_lane(r, HIDDEN_PAD),
                            _pad_lane(z, HIDDEN_PAD),
                            _pad_lane(n, HIDDEN_PAD)], axis=1)


def prepare_params(params):
    """One-time preprocessing of raw weights into the padded bf16 kernel layout.

    Hoisted out of the per-call path: do this once at init and reuse the result.
    """
    H, HP = HIDDEN, HIDDEN_PAD

    embed_p = jnp.pad(params["embed"],
                      [(0, VOCAB_PAD - params["embed"].shape[0]), (0, 0)]).astype(jnp.bfloat16)

    wih_p = _pad_gate_cols(params["wih"]).astype(jnp.bfloat16)                 # [E, 3HP]
    whh_p = jnp.pad(_pad_gate_cols(params["whh"]),
                    [(0, HP - H), (0, 0)]).astype(jnp.bfloat16)                # [HP, 3HP]

    bih, bhh = params["bih"], params["bhh"]                                    # [1, 3H] each
    bif = jnp.concatenate([
        _pad_lane(bih[:, 0:H] + bhh[:, 0:H], HP),
        _pad_lane(bih[:, H:2 * H] + bhh[:, H:2 * H], HP),
        _pad_lane(bih[:, 2 * H:3 * H], HP),
    ], axis=1).astype(jnp.float32)                                             # [1, 3HP]
    bhn = _pad_lane(bhh[:, 2 * H:3 * H], HP).astype(jnp.float32)               # [1, HP]

    # Classifier: feature index of the flattened GRU output is t*H + h (matches
    # torch flatten(1, 2) of [B, T, H]); pad both the hidden rows and OUT lanes.
    w3 = params["wout"].reshape(SEQ, H, OUT)                                   # [T, H, OUT]
    w3 = jnp.pad(w3, [(0, 0), (0, HP - H), (0, OUT_PAD - OUT)])                # [T, HP, OUTP]
    wout_p = w3.reshape(SEQ * HP, OUT_PAD).astype(jnp.bfloat16)                # [T*HP, OUTP]
    bout_p = _pad_lane(params["bout"], OUT_PAD).astype(jnp.float32)            # [1, OUTP]

    return dict(embed=embed_p, wih=wih_p, whh=whh_p, bif=bif, bhn=bhn,
                wout=wout_p, bout=bout_p)


def text_classifier_forward(tokens, prep):
    """tokens: int32 [B, T] (B a multiple of 8). Returns softmax probs [B, OUT]."""
    B, T = tokens.shape
    assert B % B_BLK == 0, "batch must be a multiple of 8 (sublane rule per grid block)"
    assert T == SEQ
    n_blk = B // B_BLK

    # Time-major token ids, [T, B, 1] so the batch axis can be block-split by the grid.
    tok_tm = jnp.transpose(tokens, (1, 0))[:, :, None].astype(jnp.int32)

    grid_spec = pltpu.PrefetchScalarGridSpec(
        num_scalar_prefetch=0,
        grid=(n_blk,),
        in_specs=[
            pl.BlockSpec((T, B_BLK, 1), lambda j: (0, j, 0)),                 # tokens
            pl.BlockSpec((VOCAB_PAD, EMBED), lambda j: (0, 0)),               # embed
            pl.BlockSpec((EMBED, 3 * HIDDEN_PAD), lambda j: (0, 0)),          # wih
            pl.BlockSpec((HIDDEN_PAD, 3 * HIDDEN_PAD), lambda j: (0, 0)),     # whh
            pl.BlockSpec((1, 3 * HIDDEN_PAD), lambda j: (0, 0)),              # bif
            pl.BlockSpec((1, HIDDEN_PAD), lambda j: (0, 0)),                  # bhn
            pl.BlockSpec((T * HIDDEN_PAD, OUT_PAD), lambda j: (0, 0)),        # wout
            pl.BlockSpec((1, OUT_PAD), lambda j: (0, 0)),                     # bout
        ],
        out_specs=pl.BlockSpec((B_BLK, OUT_PAD), lambda j: (j, 0)),
        scratch_shapes=[pltpu.VMEM((T * B_BLK, 3 * HIDDEN_PAD), jnp.float32)],
    )

    probs_pad = pl.pallas_call(
        gru_classifier_kernel,
        out_shape=jax.ShapeDtypeStruct((B, OUT_PAD), jnp.float32),
        grid_spec=grid_spec,
        compiler_params=pltpu.CompilerParams(
            dimension_semantics=("parallel",)),   # both v7x TensorCores; no-op on v5e/v6e
    )(tok_tm, prep["embed"], prep["wih"], prep["whh"], prep["bif"], prep["bhn"],
      prep["wout"], prep["bout"])

    return probs_pad[:, :OUT]


def init_params(key):
    ks = jax.random.split(key, 7)
    k = 1.0 / jnp.sqrt(jnp.float32(HIDDEN))
    k2 = 1.0 / jnp.sqrt(jnp.float32(SEQ * HIDDEN))
    return dict(
        embed=jax.random.normal(ks[0], (VOCAB, EMBED), jnp.float32),
        wih=jax.random.uniform(ks[1], (EMBED, 3 * HIDDEN), jnp.float32, -k, k),
        whh=jax.random.uniform(ks[2], (HIDDEN, 3 * HIDDEN), jnp.float32, -k, k),
        bih=jax.random.uniform(ks[3], (1, 3 * HIDDEN), jnp.float32, -k, k),
        bhh=jax.random.uniform(ks[4], (1, 3 * HIDDEN), jnp.float32, -k, k),
        wout=jax.random.uniform(ks[5], (SEQ * HIDDEN, OUT), jnp.float32, -k2, k2),
        bout=jax.random.uniform(ks[6], (1, OUT), jnp.float32, -k2, k2),
    )


if __name__ == "__main__":
    root = jax.random.PRNGKey(0)
    k_params, k_tokens = jax.random.split(root)
    params = init_params(k_params)
    tokens = jax.random.randint(k_tokens, (BATCH, SEQ), 0, VOCAB, dtype=jnp.int32)

    # One-time weight preparation (outside the per-call path).
    prep = prepare_params(params)
    prep = jax.tree_util.tree_map(jax.block_until_ready, prep)

    fwd = jax.jit(text_classifier_forward)
    probs = jax.block_until_ready(fwd(tokens, prep))

    assert probs.shape == (BATCH, OUT)
    assert bool(jnp.all(jnp.isfinite(probs)))
    assert bool(jnp.all(probs >= 0.0))
    # Exact softmax divide -> row sums match 1 to f32 accuracy.
    assert bool(jnp.all(jnp.abs(jnp.sum(probs, axis=1) - 1.0) < 1e-3))
    print("KERNEL_OK")
</pallas_src>

<mosaic_0001>
module attributes {stable_mosaic.version = 11 : i64} {
  func.func @gru_classifier_kernel(%arg0: i32, %arg1: memref<8x8x1xi32, #tpu.memory_space<vmem>>, %arg2: memref<128x64xbf16, #tpu.memory_space<vmem>>, %arg3: memref<64x384xbf16, #tpu.memory_space<vmem>>, %arg4: memref<128x384xbf16, #tpu.memory_space<vmem>>, %arg5: memref<1x384xf32, #tpu.memory_space<vmem>>, %arg6: memref<1x128xf32, #tpu.memory_space<vmem>>, %arg7: memref<1024x128xbf16, #tpu.memory_space<vmem>>, %arg8: memref<1x128xf32, #tpu.memory_space<vmem>>, %arg9: memref<8x128xf32, #tpu.memory_space<vmem>>, %arg10: memref<64x384xf32, #tpu.memory_space<vmem>>) attributes {dimension_semantics = [#tpu.dimension_semantics<parallel>], iteration_bounds = array<i64: 2>, scalar_prefetch = 0 : i64, scratch_operands = 1 : i64, tpu.core_type = #tpu.core_type<tc>, window_params = [{transform_indices = @transform_0, window_bounds = array<i64: 8, 8, 1>}, {pipeline_mode = #tpu.pipeline_mode<synchronous>, transform_indices = @transform_1, window_bounds = array<i64: 128, 64>}, {pipeline_mode = #tpu.pipeline_mode<synchronous>, transform_indices = @transform_2, window_bounds = array<i64: 64, 384>}, {pipeline_mode = #tpu.pipeline_mode<synchronous>, transform_indices = @transform_3, window_bounds = array<i64: 128, 384>}, {pipeline_mode = #tpu.pipeline_mode<synchronous>, transform_indices = @transform_4, window_bounds = array<i64: 1, 384>}, {pipeline_mode = #tpu.pipeline_mode<synchronous>, transform_indices = @transform_5, window_bounds = array<i64: 1, 128>}, {pipeline_mode = #tpu.pipeline_mode<synchronous>, transform_indices = @transform_6, window_bounds = array<i64: 1024, 128>}, {pipeline_mode = #tpu.pipeline_mode<synchronous>, transform_indices = @transform_7, window_bounds = array<i64: 1, 128>}, {transform_indices = @transform_8, window_bounds = array<i64: 8, 128>}]} {
    %0 = tpu.iota {dimensions = array<i32: 2>} : vector<8x8x128xi32>
    %c0 = arith.constant 0 : index
    %c0_0 = arith.constant 0 : index
    %c0_1 = arith.constant 0 : index
    %1 = vector.load %arg1[%c0, %c0_0, %c0_1] : memref<8x8x1xi32, #tpu.memory_space<vmem>>, vector<8x8x1xi32>
    %2 = vector.broadcast %1 : vector<8x8x1xi32> to vector<8x8x128xi32>
    %3 = arith.cmpi eq, %0, %2 : vector<8x8x128xi32>
    %4 = arith.extui %3 : vector<8x8x128xi1> to vector<8x8x128xi32>
    %5 = arith.sitofp %4 : vector<8x8x128xi32> to vector<8x8x128xf32>
    %6 = vector.shape_cast %5 : vector<8x8x128xf32> to vector<64x128xf32>
    %7 = arith.truncf %6 : vector<64x128xf32> to vector<64x128xbf16>
    %c0_2 = arith.constant 0 : index
    %c0_3 = arith.constant 0 : index
    %8 = vector.load %arg2[%c0_2, %c0_3] : memref<128x64xbf16, #tpu.memory_space<vmem>>, vector<128x64xbf16>
    %cst = arith.constant dense<0.000000e+00> : vector<64x64xf32>
    %9 = tpu.matmul %7, %8, %cst {dimension_numbers = #tpu.dot_dimension_numbers<[1], [0], [0], [1], [0, 0, 1, 1], [], []>} : vector<64x128xbf16>, vector<128x64xbf16>, vector<64x64xf32> -> vector<64x64xf32>
    %10 = arith.truncf %9 : vector<64x64xf32> to vector<64x64xbf16>
    %c0_4 = arith.constant 0 : index
    %c0_5 = arith.constant 0 : index
    %11 = vector.load %arg3[%c0_4, %c0_5] : memref<64x384xbf16, #tpu.memory_space<vmem>>, vector<64x384xbf16>
    %cst_6 = arith.constant dense<0.000000e+00> : vector<64x384xf32>
    %12 = tpu.matmul %10, %11, %cst_6 {dimension_numbers = #tpu.dot_dimension_numbers<[1], [0], [0], [1], [0, 0, 1, 1], [], []>} : vector<64x64xbf16>, vector<64x384xbf16>, vector<64x384xf32> -> vector<64x384xf32>
    %c0_7 = arith.constant 0 : index
    %c0_8 = arith.constant 0 : index
    %13 = vector.load %arg5[%c0_7, %c0_8] : memref<1x384xf32, #tpu.memory_space<vmem>>, vector<1x384xf32>
    %14 = vector.broadcast %13 : vector<1x384xf32> to vector<64x384xf32>
    %15 = arith.addf %12, %14 : vector<64x384xf32>
    %c0_9 = arith.constant 0 : index
    %c0_10 = arith.constant 0 : index
    %16 = vector.load %arg10[%c0_9, %c0_10] : memref<64x384xf32, #tpu.memory_space<vmem>>, vector<64x384xf32>
    tpu.vector_store %arg10[%c0_9, %c0_10], %15 {strides = array<i32>} : memref<64x384xf32, #tpu.memory_space<vmem>>, vector<64x384xf32>,
    %c0_11 = arith.constant 0 : index
    %c0_12 = arith.constant 0 : index
    %17 = vector.load %arg6[%c0_11, %c0_12] : memref<1x128xf32, #tpu.memory_space<vmem>>, vector<1x128xf32>
    %18 = vector.shape_cast %17 : vector<1x128xf32> to vector<1x128xf32>
    %19 = vector.broadcast %18 : vector<1x128xf32> to vector<8x128xf32>
    %cst_13 = arith.constant 0.000000e+00 : f32
    %20 = vector.broadcast %cst_13 : f32 to vector<8x128xf32>
    %c0_14 = arith.constant 0 : index
    %c0_15 = arith.constant 0 : index
    %21 = vector.load %arg10[%c0_14, %c0_15] : memref<64x384xf32, #tpu.memory_space<vmem>>, vector<8x384xf32>
    %22 = arith.truncf %20 : vector<8x128xf32> to vector<8x128xbf16>
    %c0_16 = arith.constant 0 : index
    %c0_17 = arith.constant 0 : index
    %23 = vector.load %arg4[%c0_16, %c0_17] : memref<128x384xbf16, #tpu.memory_space<vmem>>, vector<128x384xbf16>
    %cst_18 = arith.constant dense<0.000000e+00> : vector<8x384xf32>
    %24 = tpu.matmul %22, %23, %cst_18 {dimension_numbers = #tpu.dot_dimension_numbers<[1], [0], [0], [1], [0, 0, 1, 1], [], []>} : vector<8x128xbf16>, vector<128x384xbf16>, vector<8x384xf32> -> vector<8x384xf32>
    %25 = vector.extract_strided_slice %21 {offsets = [0, 0], sizes = [8, 256], strides = [1, 1]} : vector<8x384xf32> to vector<8x256xf32>
    %26 = vector.extract_strided_slice %24 {offsets = [0, 0], sizes = [8, 256], strides = [1, 1]} : vector<8x384xf32> to vector<8x256xf32>
    %27 = arith.addf %25, %26 : vector<8x256xf32>
    %28 = arith.negf %27 : vector<8x256xf32>
    %29 = math.exp %28 : vector<8x256xf32>
    %cst_19 = arith.constant 1.000000e+00 : f32
    %30 = vector.broadcast %cst_19 : f32 to vector<8x256xf32>
    %31 = arith.addf %30, %29 : vector<8x256xf32>
    %32 = arith.divf %30, %31 : vector<8x256xf32>
    %33 = vector.extract_strided_slice %32 {offsets = [0, 0], sizes = [8, 128], strides = [1, 1]} : vector<8x256xf32> to vector<8x128xf32>
    %34 = vector.extract_strided_slice %32 {offsets = [0, 128], sizes = [8, 128], strides = [1, 1]} : vector<8x256xf32> to vector<8x128xf32>
    %35 = vector.extract_strided_slice %21 {offsets = [0, 256], sizes = [8, 128], strides = [1, 1]} : vector<8x384xf32> to vector<8x128xf32>
    %36 = vector.extract_strided_slice %24 {offsets = [0, 256], sizes = [8, 128], strides = [1, 1]} : vector<8x384xf32> to vector<8x128xf32>
    %37 = arith.addf %36, %19 : vector<8x128xf32>
    %38 = arith.mulf %33, %37 : vector<8x128xf32>
    %39 = arith.addf %35, %38 : vector<8x128xf32>
    %40 = math.tanh %39 : vector<8x128xf32>
    %41 = arith.subf %20, %40 : vector<8x128xf32>
    %42 = arith.mulf %34, %41 : vector<8x128xf32>
    %43 = arith.addf %40, %42 : vector<8x128xf32>
    %cst_20 = arith.constant 0.000000e+00 : f32
    %44 = vector.broadcast %cst_20 : f32 to vector<8x128xf32>
    %45 = arith.cmpf oge, %43, %44 : vector<8x128xf32>
    %cst_21 = arith.constant 0.229166672 : f32
    %46 = vector.broadcast %cst_21 : f32 to vector<8x128xf32>
    %47 = arith.mulf %43, %46 : vector<8x128xf32>
    %48 = arith.select %45, %43, %47 : vector<8x128xi1>, vector<8x128xf32>
    %49 = arith.truncf %48 : vector<8x128xf32> to vector<8x128xbf16>
    %c8 = arith.constant 8 : index
    %c0_22 = arith.constant 0 : index
    %50 = vector.load %arg10[%c8, %c0_22] : memref<64x384xf32, #tpu.memory_space<vmem>>, vector<8x384xf32>
    %51 = arith.truncf %43 : vector<8x128xf32> to vector<8x128xbf16>
    %c0_23 = arith.constant 0 : index
    %c0_24 = arith.constant 0 : index
    %52 = vector.load %arg4[%c0_23, %c0_24] : memref<128x384xbf16, #tpu.memory_space<vmem>>, vector<128x384xbf16>
    %cst_25 = arith.constant dense<0.000000e+00> : vector<8x384xf32>
    %53 = tpu.matmul %51, %52, %cst_25 {dimension_numbers = #tpu.dot_dimension_numbers<[1], [0], [0], [1], [0, 0, 1, 1], [], []>} : vector<8x128xbf16>, vector<128x384xbf16>, vector<8x384xf32> -> vector<8x384xf32>
    %54 = vector.extract_strided_slice %50 {offsets = [0, 0], sizes = [8, 256], strides = [1, 1]} : vector<8x384xf32> to vector<8x256xf32>
    %55 = vector.extract_strided_slice %53 {offsets = [0, 0], sizes = [8, 256], strides = [1, 1]} : vector<8x384xf32> to vector<8x256xf32>
    %56 = arith.addf %54, %55 : vector<8x256xf32>
    %57 = arith.negf %56 : vector<8x256xf32>
    %58 = math.exp %57 : vector<8x256xf32>
    %cst_26 = arith.constant 1.000000e+00 : f32
    %59 = vector.broadcast %cst_26 : f32 to vector<8x256xf32>
    %60 = arith.addf %59, %58 : vector<8x256xf32>
    %61 = arith.divf %59, %60 : vector<8x256xf32>
    %62 = vector.extract_strided_slice %61 {offsets = [0, 0], sizes = [8, 128], strides = [1, 1]} : vector<8x256xf32> to vector<8x128xf32>
    %63 = vector.extract_strided_slice %61 {offsets = [0, 128], sizes = [8, 128], strides = [1, 1]} : vector<8x256xf32> to vector<8x128xf32>
    %64 = vector.extract_strided_slice %50 {offsets = [0, 256], sizes = [8, 128], strides = [1, 1]} : vector<8x384xf32> to vector<8x128xf32>
    %65 = vector.extract_strided_slice %53 {offsets = [0, 256], sizes = [8, 128], strides = [1, 1]} : vector<8x384xf32> to vector<8x128xf32>
    %66 = arith.addf %65, %19 : vector<8x128xf32>
    %67 = arith.mulf %62, %66 : vector<8x128xf32>
    %68 = arith.addf %64, %67 : vector<8x128xf32>
    %69 = math.tanh %68 : vector<8x128xf32>
    %70 = arith.subf %43, %69 : vector<8x128xf32>
    %71 = arith.mulf %63, %70 : vector<8x128xf32>
    %72 = arith.addf %69, %71 : vector<8x128xf32>
    %cst_27 = arith.constant 0.000000e+00 : f32
    %73 = vector.broadcast %cst_27 : f32 to vector<8x128xf32>
    %74 = arith.cmpf oge, %72, %73 : vector<8x128xf32>
    %cst_28 = arith.constant 0.229166672 : f32
    %75 = vector.broadcast %cst_28 : f32 to vector<8x128xf32>
    %76 = arith.mulf %72, %75 : vector<8x128xf32>
    %77 = arith.select %74, %72, %76 : vector<8x128xi1>, vector<8x128xf32>
    %78 = arith.truncf %77 : vector<8x128xf32> to vector<8x128xbf16>
    %c16 = arith.constant 16 : index
    %c0_29 = arith.constant 0 : index
    %79 = vector.load %arg10[%c16, %c0_29] : memref<64x384xf32, #tpu.memory_space<vmem>>, vector<8x384xf32>
    %80 = arith.truncf %72 : vector<8x128xf32> to vector<8x128xbf16>
    %c0_30 = arith.constant 0 : index
    %c0_31 = arith.constant 0 : index
    %81 = vector.load %arg4[%c0_30, %c0_31] : memref<128x384xbf16, #tpu.memory_space<vmem>>, vector<128x384xbf16>
    %cst_32 = arith.constant dense<0.000000e+00> : vector<8x384xf32>
    %82 = tpu.matmul %80, %81, %cst_32 {dimension_numbers = #tpu.dot_dimension_numbers<[1], [0], [0], [1], [0, 0, 1, 1], [], []>} : vector<8x128xbf16>, vector<128x384xbf16>, vector<8x384xf32> -> vector<8x384xf32>
    %83 = vector.extract_strided_slice %79 {offsets = [0, 0], sizes = [8, 256], strides = [1, 1]} : vector<8x384xf32> to vector<8x256xf32>
    %84 = vector.extract_strided_slice %82 {offsets = [0, 0], sizes = [8, 256], strides = [1, 1]} : vector<8x384xf32> to vector<8x256xf32>
    %85 = arith.addf %83, %84 : vector<8x256xf32>
    %86 = arith.negf %85 : vector<8x256xf32>
    %87 = math.exp %86 : vector<8x256xf32>
    %cst_33 = arith.constant 1.000000e+00 : f32
    %88 = vector.broadcast %cst_33 : f32 to vector<8x256xf32>
    %89 = arith.addf %88, %87 : vector<8x256xf32>
    %90 = arith.divf %88, %89 : vector<8x256xf32>
    %91 = vector.extract_strided_slice %90 {offsets = [0, 0], sizes = [8, 128], strides = [1, 1]} : vector<8x256xf32> to vector<8x128xf32>
    %92 = vector.extract_strided_slice %90 {offsets = [0, 128], sizes = [8, 128], strides = [1, 1]} : vector<8x256xf32> to vector<8x128xf32>
    %93 = vector.extract_strided_slice %79 {offsets = [0, 256], sizes = [8, 128], strides = [1, 1]} : vector<8x384xf32> to vector<8x128xf32>
    %94 = vector.extract_strided_slice %82 {offsets = [0, 256], sizes = [8, 128], strides = [1, 1]} : vector<8x384xf32> to vector<8x128xf32>
    %95 = arith.addf %94, %19 : vector<8x128xf32>
    %96 = arith.mulf %91, %95 : vector<8x128xf32>
    %97 = arith.addf %93, %96 : vector<8x128xf32>
    %98 = math.tanh %97 : vector<8x128xf32>
    %99 = arith.subf %72, %98 : vector<8x128xf32>
    %100 = arith.mulf %92, %99 : vector<8x128xf32>
    %101 = arith.addf %98, %100 : vector<8x128xf32>
    %cst_34 = arith.constant 0.000000e+00 : f32
    %102 = vector.broadcast %cst_34 : f32 to vector<8x128xf32>
    %103 = arith.cmpf oge, %101, %102 : vector<8x128xf32>
    %cst_35 = arith.constant 0.229166672 : f32
    %104 = vector.broadcast %cst_35 : f32 to vector<8x128xf32>
    %105 = arith.mulf %101, %104 : vector<8x128xf32>
    %106 = arith.select %103, %101, %105 : vector<8x128xi1>, vector<8x128xf32>
    %107 = arith.truncf %106 : vector<8x128xf32> to vector<8x128xbf16>
    %c24 = arith.constant 24 : index
    %c0_36 = arith.constant 0 : index
    %108 = vector.load %arg10[%c24, %c0_36] : memref<64x384xf32, #tpu.memory_space<vmem>>, vector<8x384xf32>
    %109 = arith.truncf %101 : vector<8x128xf32> to vector<8x128xbf16>
    %c0_37 = arith.constant 0 : index
    %c0_38 = arith.constant 0 : index
    %110 = vector.load %arg4[%c0_37, %c0_38] : memref<128x384xbf16, #tpu.memory_space<vmem>>, vector<128x384xbf16>
    %cst_39 = arith.constant dense<0.000000e+00> : vector<8x384xf32>
    %111 = tpu.matmul %109, %110, %cst_39 {dimension_numbers = #tpu.dot_dimension_numbers<[1], [0], [0], [1], [0, 0, 1, 1], [], []>} : vector<8x128xbf16>, vector<128x384xbf16>, vector<8x384xf32> -> vector<8x384xf32>
    %112 = vector.extract_strided_slice %108 {offsets = [0, 0], sizes = [8, 256], strides = [1, 1]} : vector<8x384xf32> to vector<8x256xf32>
    %113 = vector.extract_strided_slice %111 {offsets = [0, 0], sizes = [8, 256], strides = [1, 1]} : vector<8x384xf32> to vector<8x256xf32>
    %114 = arith.addf %112, %113 : vector<8x256xf32>
    %115 = arith.negf %114 : vector<8x256xf32>
    %116 = math.exp %115 : vector<8x256xf32>
    %cst_40 = arith.constant 1.000000e+00 : f32
    %117 = vector.broadcast %cst_40 : f32 to vector<8x256xf32>
    %118 = arith.addf %117, %116 : vector<8x256xf32>
    %119 = arith.divf %117, %118 : vector<8x256xf32>
    %120 = vector.extract_strided_slice %119 {offsets = [0, 0], sizes = [8, 128], strides = [1, 1]} : vector<8x256xf32> to vector<8x128xf32>
    %121 = vector.extract_strided_slice %119 {offsets = [0, 128], sizes = [8, 128], strides = [1, 1]} : vector<8x256xf32> to vector<8x128xf32>
    %122 = vector.extract_strided_slice %108 {offsets = [0, 256], sizes = [8, 128], strides = [1, 1]} : vector<8x384xf32> to vector<8x128xf32>
    %123 = vector.extract_strided_slice %111 {offsets = [0, 256], sizes = [8, 128], strides = [1, 1]} : vector<8x384xf32> to vector<8x128xf32>
    %124 = arith.addf %123, %19 : vector<8x128xf32>
    %125 = arith.mulf %120, %124 : vector<8x128xf32>
    %126 = arith.addf %122, %125 : vector<8x128xf32>
    %127 = math.tanh %126 : vector<8x128xf32>
    %128 = arith.subf %101, %127 : vector<8x128xf32>
    %129 = arith.mulf %121, %128 : vector<8x128xf32>
    %130 = arith.addf %127, %129 : vector<8x128xf32>
    %cst_41 = arith.constant 0.000000e+00 : f32
    %131 = vector.broadcast %cst_41 : f32 to vector<8x128xf32>
    %132 = arith.cmpf oge, %130, %131 : vector<8x128xf32>
    %cst_42 = arith.constant 0.229166672 : f32
    %133 = vector.broadcast %cst_42 : f32 to vector<8x128xf32>
    %134 = arith.mulf %130, %133 : vector<8x128xf32>
    %135 = arith.select %132, %130, %134 : vector<8x128xi1>, vector<8x128xf32>
    %136 = arith.truncf %135 : vector<8x128xf32> to vector<8x128xbf16>
    %c32 = arith.constant 32 : index
    %c0_43 = arith.constant 0 : index
    %137 = vector.load %arg10[%c32, %c0_43] : memref<64x384xf32, #tpu.memory_space<vmem>>, vector<8x384xf32>
    %138 = arith.truncf %130 : vector<8x128xf32> to vector<8x128xbf16>
    %c0_44 = arith.constant 0 : index
    %c0_45 = arith.constant 0 : index
    %139 = vector.load %arg4[%c0_44, %c0_45] : memref<128x384xbf16, #tpu.memory_space<vmem>>, vector<128x384xbf16>
    %cst_46 = arith.constant dense<0.000000e+00> : vector<8x384xf32>
    %140 = tpu.matmul %138, %139, %cst_46 {dimension_numbers = #tpu.dot_dimension_numbers<[1], [0], [0], [1], [0, 0, 1, 1], [], []>} : vector<8x128xbf16>, vector<128x384xbf16>, vector<8x384xf32> -> vector<8x384xf32>
    %141 = vector.extract_strided_slice %137 {offsets = [0, 0], sizes = [8, 256], strides = [1, 1]} : vector<8x384xf32> to vector<8x256xf32>
    %142 = vector.extract_strided_slice %140 {offsets = [0, 0], sizes = [8, 256], strides = [1, 1]} : vector<8x384xf32> to vector<8x256xf32>
    %143 = arith.addf %141, %142 : vector<8x256xf32>
    %144 = arith.negf %143 : vector<8x256xf32>
    %145 = math.exp %144 : vector<8x256xf32>
    %cst_47 = arith.constant 1.000000e+00 : f32
    %146 = vector.broadcast %cst_47 : f32 to vector<8x256xf32>
    %147 = arith.addf %146, %145 : vector<8x256xf32>
    %148 = arith.divf %146, %147 : vector<8x256xf32>
    %149 = vector.extract_strided_slice %148 {offsets = [0, 0], sizes = [8, 128], strides = [1, 1]} : vector<8x256xf32> to vector<8x128xf32>
    %150 = vector.extract_strided_slice %148 {offsets = [0, 128], sizes = [8, 128], strides = [1, 1]} : vector<8x256xf32> to vector<8x128xf32>
    %151 = vector.extract_strided_slice %137 {offsets = [0, 256], sizes = [8, 128], strides = [1, 1]} : vector<8x384xf32> to vector<8x128xf32>
    %152 = vector.extract_strided_slice %140 {offsets = [0, 256], sizes = [8, 128], strides = [1, 1]} : vector<8x384xf32> to vector<8x128xf32>
    %153 = arith.addf %152, %19 : vector<8x128xf32>
    %154 = arith.mulf %149, %153 : vector<8x128xf32>
    %155 = arith.addf %151, %154 : vector<8x128xf32>
    %156 = math.tanh %155 : vector<8x128xf32>
    %157 = arith.subf %130, %156 : vector<8x128xf32>
    %158 = arith.mulf %150, %157 : vector<8x128xf32>
    %159 = arith.addf %156, %158 : vector<8x128xf32>
    %cst_48 = arith.constant 0.000000e+00 : f32
    %160 = vector.broadcast %cst_48 : f32 to vector<8x128xf32>
    %161 = arith.cmpf oge, %159, %160 : vector<8x128xf32>
    %cst_49 = arith.constant 0.229166672 : f32
    %162 = vector.broadcast %cst_49 : f32 to vector<8x128xf32>
    %163 = arith.mulf %159, %162 : vector<8x128xf32>
    %164 = arith.select %161, %159, %163 : vector<8x128xi1>, vector<8x128xf32>
    %165 = arith.truncf %164 : vector<8x128xf32> to vector<8x128xbf16>
    %c40 = arith.constant 40 : index
    %c0_50 = arith.constant 0 : index
    %166 = vector.load %arg10[%c40, %c0_50] : memref<64x384xf32, #tpu.memory_space<vmem>>, vector<8x384xf32>
    %167 = arith.truncf %159 : vector<8x128xf32> to vector<8x128xbf16>
    %c0_51 = arith.constant 0 : index
    %c0_52 = arith.constant 0 : index
    %168 = vector.load %arg4[%c0_51, %c0_52] : memref<128x384xbf16, #tpu.memory_space<vmem>>, vector<128x384xbf16>
    %cst_53 = arith.constant dense<0.000000e+00> : vector<8x384xf32>
    %169 = tpu.matmul %167, %168, %cst_53 {dimension_numbers = #tpu.dot_dimension_numbers<[1], [0], [0], [1], [0, 0, 1, 1], [], []>} : vector<8x128xbf16>, vector<128x384xbf16>, vector<8x384xf32> -> vector<8x384xf32>
    %170 = vector.extract_strided_slice %166 {offsets = [0, 0], sizes = [8, 256], strides = [1, 1]} : vector<8x384xf32> to vector<8x256xf32>
    %171 = vector.extract_strided_slice %169 {offsets = [0, 0], sizes = [8, 256], strides = [1, 1]} : vector<8x384xf32> to vector<8x256xf32>
    %172 = arith.addf %170, %171 : vector<8x256xf32>
    %173 = arith.negf %172 : vector<8x256xf32>
    %174 = math.exp %173 : vector<8x256xf32>
    %cst_54 = arith.constant 1.000000e+00 : f32
    %175 = vector.broadcast %cst_54 : f32 to vector<8x256xf32>
    %176 = arith.addf %175, %174 : vector<8x256xf32>
    %177 = arith.divf %175, %176 : vector<8x256xf32>
    %178 = vector.extract_strided_slice %177 {offsets = [0, 0], sizes = [8, 128], strides = [1, 1]} : vector<8x256xf32> to vector<8x128xf32>
    %179 = vector.extract_strided_slice %177 {offsets = [0, 128], sizes = [8, 128], strides = [1, 1]} : vector<8x256xf32> to vector<8x128xf32>
    %180 = vector.extract_strided_slice %166 {offsets = [0, 256], sizes = [8, 128], strides = [1, 1]} : vector<8x384xf32> to vector<8x128xf32>
    %181 = vector.extract_strided_slice %169 {offsets = [0, 256], sizes = [8, 128], strides = [1, 1]} : vector<8x384xf32> to vector<8x128xf32>
    %182 = arith.addf %181, %19 : vector<8x128xf32>
    %183 = arith.mulf %178, %182 : vector<8x128xf32>
    %184 = arith.addf %180, %183 : vector<8x128xf32>
    %185 = math.tanh %184 : vector<8x128xf32>
    %186 = arith.subf %159, %185 : vector<8x128xf32>
    %187 = arith.mulf %179, %186 : vector<8x128xf32>
    %188 = arith.addf %185, %187 : vector<8x128xf32>
    %cst_55 = arith.constant 0.000000e+00 : f32
    %189 = vector.broadcast %cst_55 : f32 to vector<8x128xf32>
    %190 = arith.cmpf oge, %188, %189 : vector<8x128xf32>
    %cst_56 = arith.constant 0.229166672 : f32
    %191 = vector.broadcast %cst_56 : f32 to vector<8x128xf32>
    %192 = arith.mulf %188, %191 : vector<8x128xf32>
    %193 = arith.select %190, %188, %192 : vector<8x128xi1>, vector<8x128xf32>
    %194 = arith.truncf %193 : vector<8x128xf32> to vector<8x128xbf16>
    %c48 = arith.constant 48 : index
    %c0_57 = arith.constant 0 : index
    %195 = vector.load %arg10[%c48, %c0_57] : memref<64x384xf32, #tpu.memory_space<vmem>>, vector<8x384xf32>
    %196 = arith.truncf %188 : vector<8x128xf32> to vector<8x128xbf16>
    %c0_58 = arith.constant 0 : index
    %c0_59 = arith.constant 0 : index
    %197 = vector.load %arg4[%c0_58, %c0_59] : memref<128x384xbf16, #tpu.memory_space<vmem>>, vector<128x384xbf16>
    %cst_60 = arith.constant dense<0.000000e+00> : vector<8x384xf32>
    %198 = tpu.matmul %196, %197, %cst_60 {dimension_numbers = #tpu.dot_dimension_numbers<[1], [0], [0], [1], [0, 0, 1, 1], [], []>} : vector<8x128xbf16>, vector<128x384xbf16>, vector<8x384xf32> -> vector<8x384xf32>
    %199 = vector.extract_strided_slice %195 {offsets = [0, 0], sizes = [8, 256], strides = [1, 1]} : vector<8x384xf32> to vector<8x256xf32>
    %200 = vector.extract_strided_slice %198 {offsets = [0, 0], sizes = [8, 256], strides = [1, 1]} : vector<8x384xf32> to vector<8x256xf32>
    %201 = arith.addf %199, %200 : vector<8x256xf32>
    %202 = arith.negf %201 : vector<8x256xf32>
    %203 = math.exp %202 : vector<8x256xf32>
    %cst_61 = arith.constant 1.000000e+00 : f32
    %204 = vector.broadcast %cst_61 : f32 to vector<8x256xf32>
    %205 = arith.addf %204, %203 : vector<8x256xf32>
    %206 = arith.divf %204, %205 : vector<8x256xf32>
    %207 = vector.extract_strided_slice %206 {offsets = [0, 0], sizes = [8, 128], strides = [1, 1]} : vector<8x256xf32> to vector<8x128xf32>
    %208 = vector.extract_strided_slice %206 {offsets = [0, 128], sizes = [8, 128], strides = [1, 1]} : vector<8x256xf32> to vector<8x128xf32>
    %209 = vector.extract_strided_slice %195 {offsets = [0, 256], sizes = [8, 128], strides = [1, 1]} : vector<8x384xf32> to vector<8x128xf32>
    %210 = vector.extract_strided_slice %198 {offsets = [0, 256], sizes = [8, 128], strides = [1, 1]} : vector<8x384xf32> to vector<8x128xf32>
    %211 = arith.addf %210, %19 : vector<8x128xf32>
    %212 = arith.mulf %207, %211 : vector<8x128xf32>
    %213 = arith.addf %209, %212 : vector<8x128xf32>
    %214 = math.tanh %213 : vector<8x128xf32>
    %215 = arith.subf %188, %214 : vector<8x128xf32>
    %216 = arith.mulf %208, %215 : vector<8x128xf32>
    %217 = arith.addf %214, %216 : vector<8x128xf32>
    %cst_62 = arith.constant 0.000000e+00 : f32
    %218 = vector.broadcast %cst_62 : f32 to vector<8x128xf32>
    %219 = arith.cmpf oge, %217, %218 : vector<8x128xf32>
    %cst_63 = arith.constant 0.229166672 : f32
    %220 = vector.broadcast %cst_63 : f32 to vector<8x128xf32>
    %221 = arith.mulf %217, %220 : vector<8x128xf32>
    %222 = arith.select %219, %217, %221 : vector<8x128xi1>, vector<8x128xf32>
    %223 = arith.truncf %222 : vector<8x128xf32> to vector<8x128xbf16>
    %c56 = arith.constant 56 : index
    %c0_64 = arith.constant 0 : index
    %224 = vector.load %arg10[%c56, %c0_64] : memref<64x384xf32, #tpu.memory_space<vmem>>, vector<8x384xf32>
    %225 = arith.truncf %217 : vector<8x128xf32> to vector<8x128xbf16>
    %c0_65 = arith.constant 0 : index
    %c0_66 = arith.constant 0 : index
    %226 = vector.load %arg4[%c0_65, %c0_66] : memref<128x384xbf16, #tpu.memory_space<vmem>>, vector<128x384xbf16>
    %cst_67 = arith.constant dense<0.000000e+00> : vector<8x384xf32>
    %227 = tpu.matmul %225, %226, %cst_67 {dimension_numbers = #tpu.dot_dimension_numbers<[1], [0], [0], [1], [0, 0, 1, 1], [], []>} : vector<8x128xbf16>, vector<128x384xbf16>, vector<8x384xf32> -> vector<8x384xf32>
    %228 = vector.extract_strided_slice %224 {offsets = [0, 0], sizes = [8, 256], strides = [1, 1]} : vector<8x384xf32> to vector<8x256xf32>
    %229 = vector.extract_strided_slice %227 {offsets = [0, 0], sizes = [8, 256], strides = [1, 1]} : vector<8x384xf32> to vector<8x256xf32>
    %230 = arith.addf %228, %229 : vector<8x256xf32>
    %231 = arith.negf %230 : vector<8x256xf32>
    %232 = math.exp %231 : vector<8x256xf32>
    %cst_68 = arith.constant 1.000000e+00 : f32
    %233 = vector.broadcast %cst_68 : f32 to vector<8x256xf32>
    %234 = arith.addf %233, %232 : vector<8x256xf32>
    %235 = arith.divf %233, %234 : vector<8x256xf32>
    %236 = vector.extract_strided_slice %235 {offsets = [0, 0], sizes = [8, 128], strides = [1, 1]} : vector<8x256xf32> to vector<8x128xf32>
    %237 = vector.extract_strided_slice %235 {offsets = [0, 128], sizes = [8, 128], strides = [1, 1]} : vector<8x256xf32> to vector<8x128xf32>
    %238 = vector.extract_strided_slice %224 {offsets = [0, 256], sizes = [8, 128], strides = [1, 1]} : vector<8x384xf32> to vector<8x128xf32>
    %239 = vector.extract_strided_slice %227 {offsets = [0, 256], sizes = [8, 128], strides = [1, 1]} : vector<8x384xf32> to vector<8x128xf32>
    %240 = arith.addf %239, %19 : vector<8x128xf32>
    %241 = arith.mulf %236, %240 : vector<8x128xf32>
    %242 = arith.addf %238, %241 : vector<8x128xf32>
    %243 = math.tanh %242 : vector<8x128xf32>
    %244 = arith.subf %217, %243 : vector<8x128xf32>
    %245 = arith.mulf %237, %244 : vector<8x128xf32>
    %246 = arith.addf %243, %245 : vector<8x128xf32>
    %cst_69 = arith.constant 0.000000e+00 : f32
    %247 = vector.broadcast %cst_69 : f32 to vector<8x128xf32>
    %248 = arith.cmpf oge, %246, %247 : vector<8x128xf32>
    %cst_70 = arith.constant 0.229166672 : f32
    %249 = vector.broadcast %cst_70 : f32 to vector<8x128xf32>
    %250 = arith.mulf %246, %249 : vector<8x128xf32>
    %251 = arith.select %248, %246, %250 : vector<8x128xi1>, vector<8x128xf32>
    %252 = arith.truncf %251 : vector<8x128xf32> to vector<8x128xbf16>
    %253 = tpu.concatenate %49, %78, %107, %136, %165, %194, %223, %252 in 1 : vector<8x128xbf16>, vector<8x128xbf16>, vector<8x128xbf16>, vector<8x128xbf16>, vector<8x128xbf16>, vector<8x128xbf16>, vector<8x128xbf16>, vector<8x128xbf16> -> vector<8x1024xbf16>
    %c0_71 = arith.constant 0 : index
    %c0_72 = arith.constant 0 : index
    %254 = vector.load %arg7[%c0_71, %c0_72] : memref<1024x128xbf16, #tpu.memory_space<vmem>>, vector<1024x128xbf16>
    %cst_73 = arith.constant dense<0.000000e+00> : vector<8x128xf32>
    %255 = tpu.matmul %253, %254, %cst_73 {dimension_numbers = #tpu.dot_dimension_numbers<[1], [0], [0], [1], [0, 0, 1, 1], [], []>} : vector<8x1024xbf16>, vector<1024x128xbf16>, vector<8x128xf32> -> vector<8x128xf32>
    %c0_74 = arith.constant 0 : index
    %c0_75 = arith.constant 0 : index
    %256 = vector.load %arg8[%c0_74, %c0_75] : memref<1x128xf32, #tpu.memory_space<vmem>>, vector<1x128xf32>
    %257 = vector.broadcast %256 : vector<1x128xf32> to vector<8x128xf32>
    %258 = arith.addf %255, %257 : vector<8x128xf32>
    %259 = tpu.iota {dimensions = array<i32: 1>} : vector<8x128xi32>
    %c7_i32 = arith.constant 7 : i32
    %260 = vector.broadcast %c7_i32 : i32 to vector<8x128xi32>
    %261 = arith.cmpi slt, %259, %260 : vector<8x128xi32>
    %cst_76 = arith.constant -1.000000e+30 : f32
    %262 = vector.broadcast %cst_76 : f32 to vector<8x128xf32>
    %263 = arith.select %261, %258, %262 : vector<8x128xi1>, vector<8x128xf32>
    %cst_77 = arith.constant dense<0xFF800000> : vector<8xf32>
    %264 = vector.multi_reduction <maximumf>, %263, %cst_77 [1] : vector<8x128xf32> to vector<8xf32>
    %265 = vector.shape_cast %264 : vector<8xf32> to vector<8x1xf32>
    %266 = vector.broadcast %265 : vector<8x1xf32> to vector<8x128xf32>
    %267 = arith.subf %263, %266 : vector<8x128xf32>
    %268 = math.exp %267 : vector<8x128xf32>
    %cst_78 = arith.constant dense<0.000000e+00> : vector<8xf32>
    %269 = vector.multi_reduction <add>, %268, %cst_78 [1] : vector<8x128xf32> to vector<8xf32>
    %270 = vector.shape_cast %269 : vector<8xf32> to vector<8x1xf32>
    %271 = vector.broadcast %270 : vector<8x1xf32> to vector<8x128xf32>
    %272 = arith.divf %268, %271 : vector<8x128xf32>
    %c0_79 = arith.constant 0 : index
    %c0_80 = arith.constant 0 : index
    %273 = vector.load %arg9[%c0_79, %c0_80] : memref<8x128xf32, #tpu.memory_space<vmem>>, vector<8x128xf32>
    tpu.vector_store %arg9[%c0_79, %c0_80], %272 {strides = array<i32>} : memref<8x128xf32, #tpu.memory_space<vmem>>, vector<8x128xf32>,
    return
  }
  func.func @transform_0(%arg0: i32) -> (i32, i32, i32) {
    %c0_i32 = arith.constant 0 : i32
    %c0_i32_0 = arith.constant 0 : i32
    %c0_i32_1 = arith.constant 0 : i32
    return %c0_i32, %arg0, %c0_i32_0 : i32, i32, i32
  }
  func.func @transform_1(%arg0: i32) -> (i32, i32) {
    %c0_i32 = arith.constant 0 : i32
    %c0_i32_0 = arith.constant 0 : i32
    %c0_i32_1 = arith.constant 0 : i32
    return %c0_i32, %c0_i32_0 : i32, i32
  }
  func.func @transform_2(%arg0: i32) -> (i32, i32) {
    %c0_i32 = arith.constant 0 : i32
    %c0_i32_0 = arith.constant 0 : i32
    %c0_i32_1 = arith.constant 0 : i32
    return %c0_i32, %c0_i32_0 : i32, i32
  }
  func.func @transform_3(%arg0: i32) -> (i32, i32) {
    %c0_i32 = arith.constant 0 : i32
    %c0_i32_0 = arith.constant 0 : i32
    %c0_i32_1 = arith.constant 0 : i32
    return %c0_i32, %c0_i32_0 : i32, i32
  }
  func.func @transform_4(%arg0: i32) -> (i32, i32) {
    %c0_i32 = arith.constant 0 : i32
    %c0_i32_0 = arith.constant 0 : i32
    %c0_i32_1 = arith.constant 0 : i32
    return %c0_i32, %c0_i32_0 : i32, i32
  }
  func.func @transform_5(%arg0: i32) -> (i32, i32) {
    %c0_i32 = arith.constant 0 : i32
    %c0_i32_0 = arith.constant 0 : i32
    %c0_i32_1 = arith.constant 0 : i32
    return %c0_i32, %c0_i32_0 : i32, i32
  }
  func.func @transform_6(%arg0: i32) -> (i32, i32) {
    %c0_i32 = arith.constant 0 : i32
    %c0_i32_0 = arith.constant 0 : i32
    %c0_i32_1 = arith.constant 0 : i32
    return %c0_i32, %c0_i32_0 : i32, i32
  }
  func.func @transform_7(%arg0: i32) -> (i32, i32) {
    %c0_i32 = arith.constant 0 : i32
    %c0_i32_0 = arith.constant 0 : i32
    %c0_i32_1 = arith.constant 0 : i32
    return %c0_i32, %c0_i32_0 : i32, i32
  }
  func.func @transform_8(%arg0: i32) -> (i32, i32) {
    %c0_i32 = arith.constant 0 : i32
    %c0_i32_0 = arith.constant 0 : i32
    return %arg0, %c0_i32 : i32, i32
  }
}

</mosaic_0001>

<bundles_post_ra>
// kernel: text_classifier_forward.1
= control target key start
LH: loop header
LB: loop body
LE: loop exit
PB: predicated region body
PF: predicated region fallthrough
CT: control target
= control target key end

     0   :  { %13 = vsyncpa [#allocation5], 0  ;;  %s3986_s0 = inlined_call_operand.vmem [shape: s32[8,16,1], index: 0, kind: input, shape index: {}]   ;;  %s3987_s1 = inlined_call_operand.vmem [shape: bf16[128,64], index: 1, kind: input, shape index: {}]   ;;  %s3988_s2 = inlined_call_operand.hbm [shape: bf16[64,384], index: 2, kind: input, shape index: {}]   ;;  %s3989_s3 = inlined_call_operand.vmem [shape: bf16[128,384], index: 3, kind: input, shape index: {}]   ;;  %s3990_s4 = inlined_call_operand.vmem [shape: f32[1,384], index: 4, kind: input, shape index: {}]   ;;  %s3991_s5 = inlined_call_operand.vmem [shape: f32[1,128], index: 5, kind: input, shape index: {}]   ;;  %s3992_s6 = inlined_call_operand.hbm [shape: bf16[1024,128], index: 6, kind: input, shape index: {}]   ;;  %s3993_s7 = inlined_call_operand.vmem [shape: f32[1,128], index: 7, kind: input, shape index: {}]   ;;  %s3994_s8 = inlined_call_operand.vmem [shape: f32[16,128], index: 8, kind: output, shape index: {}]  }
   0x1   :  { %14 = vsyncpa [#allocation7], 0  ;;  %s3299_s27 = smov 0   ;;  %s3301_s28 = smov 0  }
   0x2   :  { %s3303_s29 = smov 0  }
   0x3 LB: > { %s3315_s30 = sadd.s32 4294967295, %s3244_s29   ;;  %s3318_s9 = sadd.s32 1, %s3244_s29   ;;  %s3244_s29 = sphi %s3303_s29, %s4012_s29   ;;  %s3240_s28 = sphi %s3301_s28, %s4011_s28   ;;  %s3236_s27 = sphi %s3299_s27, %s4010_s27  }
   0x4   : > { %s24_s10 = ssub.s32 %s3244_s29, %s3318_s9  ;;  %s27_s11 = sadd.s32 1, %s3240_s28 }
   0x5   : > { %p25_p0 = scmp.eq.s32.totalorder %s24_s10, 0  ;;  %p34_p1 = scmp.ne.s32.totalorder %s3240_s28, %s3236_s27 }
   0x6   : > { %p35_p2 = scmp.eq.s32.totalorder %s3244_s29, 0  ;;  %p2416_p3 = scmp.ge.s32.totalorder %s3244_s29, 1 }
   0x7   : > { %s3328_s12 = scalar_select %p25_p0, %s3240_s28, %s27_s11  }
   0x8   : > { %p3330_p4 = por %p35_p2, %p34_p1  ;;  %p224_p5 = scmp.lt.s32.totalorder %s3244_s29, 3 }
   0x9   : > { %p3028_p6 = scmp.eq.s32.totalorder %s3315_s30, 0  ;;  %s238_s17 = sshll.u32 %s3988_s2, 4  ;;  %s239_s17 = int_to_ptr.hbm [resolvable:$true] %s238_s17 }
   0xa   : > { %p3336_p7 = pnand %p2416_p3, %p224_p5  ;;  %s3246_s18 = smov [#allocation4]  }
   0xb   : > { %s240_s19 = sshll.u32 %s3246_s18, 4  ;;  %s261_s22 = sshll.u32 %s3992_s6, 4  ;;  %s241_s19 = int_to_ptr.vmem [resolvable:$true] %s240_s19  ;;  %s262_s22 = int_to_ptr.hbm [resolvable:$true] %s261_s22 }
   0xc   : > { %p3021_p8 = pneg %p3336_p7  ;;  %s3247_s23 = smov 192  }
   0xd   : > { %s3248_s24 = smov 12   ;;  %s3249_s25 = smov [#allocation6]  }
   0xe   : > { %p3022_p9 = pnand %p3028_p6, %p3021_p8  ;;  %s263_s26 = sshll.u32 %s3249_s25, 4  ;;  %s264_s26 = int_to_ptr.vmem [resolvable:$true] %s263_s26 }
   0xf   : > { %s3250_s10 = smov 64   ;;  %s3251_s11 = smov 4  }
  0x10   : > { %3024 = dma.hbm_to_vmem [thread:$0]  (!%p3022_p9), %s239_s17, 1536, %s241_s19, [#allocation5], %s3247_s23, %s3247_s23, %s3248_s24  }
  0x11   : > { %3027 = dma.hbm_to_vmem [thread:$0]  (!%p3022_p9), %s262_s22, 8192, %s264_s26, [#allocation7], %s3250_s10, %s3250_s10, %s3251_s11  }
  0x12   : > { %p2419_p10 = scmp.ge.s32.totalorder %s3244_s29, 2 }
  0x14   : > { %276 = sbr.rel (%p2419_p10) target bundleno = 37 (0x25), region = 44 }
  0x19   : > { %279 = sbr.rel (!%p3330_p4) target bundleno = 37 (0x25), region = 48  ;;  %s281_s15 = sand.u32 (%p3330_p4), 1, %s3240_s28  }
  0x1a   : > { %s2421_s16 = sshll.u32 (%p3330_p4), %s3244_s29, 3  ;;  %s2420_s18 = sshll.u32 (%p3330_p4), %s281_s15, 6 }
  0x1b   : > { %s285_s17 = scalar_lea.vmem (%p3330_p4), %s3986_s0, %s2421_s16  ;;  %s283_s19 = scalar_lea.vmem (%p3330_p4), [#allocation3], %s2420_s18 }
  0x1c   : > { %v328_v0 = vld [vmem:[%s285_s17] sm:$0xff] (%p3330_p4)  ;;  %v330_v1 = vld [vmem:[%s285_s17 + $0x10] sm:$0xff] (%p3330_p4) }
  0x1d   : > { %v332_v2 = vld [vmem:[%s285_s17 + $0x20] sm:$0xff] (%p3330_p4)  ;;  %329 = vst [vmem:[%s283_s19] sm:$0xff] (%p3330_p4), %v328_v0  ;;  %v334_v3 = vld [vmem:[%s285_s17 + $0x30] sm:$0xff] (%p3330_p4) }
  0x1e   : > { %331 = vst [vmem:[%s283_s19 + $0x8] sm:$0xff] %v330_v1  ;;  %v336_v4 = vld [vmem:[%s285_s17 + $0x40] sm:$0xff]  ;;  %v338_v5 = vld [vmem:[%s285_s17 + $0x50] sm:$0xff] }
  0x1f   : > { %333 = vst [vmem:[%s283_s19 + $0x10] sm:$0xff] %v332_v2  ;;  %v340_v6 = vld [vmem:[%s285_s17 + $0x60] sm:$0xff]  ;;  %v342_v7 = vld [vmem:[%s285_s17 + $0x70] sm:$0xff] }
  0x20   : > { %335 = vst [vmem:[%s283_s19 + $0x18] sm:$0xff] %v334_v3 }
  0x21   : > { %337 = vst [vmem:[%s283_s19 + $0x20] sm:$0xff] %v336_v4 }
  0x22   : > { %339 = vst [vmem:[%s283_s19 + $0x28] sm:$0xff] %v338_v5 }
  0x23   : > { %341 = vst [vmem:[%s283_s19 + $0x30] sm:$0xff] %v340_v6 }
  0x24   : > { %343 = vst [vmem:[%s283_s19 + $0x38] sm:$0xff] %v342_v7 }
  0x25 PF: > { %352 = sbr.rel (%p3336_p7) target bundleno = 2195 (0x893), region = 86 }
  0x2a   : > { %s355_s29 = sand.u32 1, %s3236_s27  }
  0x2b   : > { %s2423_s13 = sshll.u32 %s355_s29, 6 }
  0x2c   : > { %s357_s22 = scalar_lea.vmem [#allocation3], %s2423_s13 }
  0x2d   : > { %3227 = dma.done.wait (%p3028_p6), [#allocation5], 1536  }
  0x2e   : > { %3229 = vsyncadd (%p3028_p6), [#allocation5], 4294965760 }
  0x2f   : > { %3231 = dma.done.wait (%p3028_p6), [#allocation7], 8192  }
  0x30   : > { %3233 = vsyncadd (%p3028_p6), [#allocation7], 4294959104  ;;  %v3252_v8 = vmov 0   ;;  %v406_v9 = vld [vmem:[%s357_s22 + $0x10] sm:$0xff]  ;;  %v404_v10 = vld [vmem:[%s357_s22] sm:$0xff]  ;;  %v402_v26 = vlaneseq  ;;  %vm649_vm12 = vcmask 523264  }
  0x31   : > { %3065 = vset.pattern.permute.xlu1 %v3252_v8  ;;  %3064 = vset.pattern.permute.xlu0 %v3252_v8  ;;  %v408_v11 = vld [vmem:[%s357_s22 + $0x20] sm:$0xff]  ;;  %v2912_v12 = vld [vmem:[%s3987_s1 + $0x38] sm:$0xff]  ;;  %v2911_v13 = vld [vmem:[%s3987_s1 + $0x30] sm:$0xff]  ;;  %v3253_v29 = vmov 1.0|1.0   ;;  %p397_p11 = scmp.lt.s32.totalorder %s3315_s30, 1 }
  0x32   : > { %3066 = vset.pattern.permute.xlu2 %v3252_v8  ;;  %419 = vperm.xlu1 %3065, %v406_v9   ;;  %v407_v14 = vld [vmem:[%s357_s22 + $0x18] sm:$0xff]  ;;  %v405_v15 = vld [vmem:[%s357_s22 + $0x8] sm:$0xff]  ;;  %v2909_v18 = vld [vmem:[%s3987_s1 + $0x20] sm:$0xff]  ;;  %v3396_v27 = vand.u32 127, %v402_v26 }
  0x33   : > { %413 = vperm.xlu0 %3064, %v404_v10   ;;  %425 = vperm.xlu2 %3066, %v408_v11   ;;  %v409_v16 = vld [vmem:[%s357_s22 + $0x28] sm:$0xff]  ;;  %v411_v19 = vld [vmem:[%s357_s22 + $0x38] sm:$0xff]  ;;  %v410_v20 = vld [vmem:[%s357_s22 + $0x30] sm:$0xff]  ;;  %s4014_s30 = smov (!%p397_p11, %s3315_s30), 1 }
  0x34   : > { %528 = vmatpush.bf16.msra.mxu0 %v2912_v12  ;;  %v2910_v17 = vld [vmem:[%s3987_s1 + $0x28] sm:$0xff]  ;;  %v2908_v21 = vld [vmem:[%s3987_s1 + $0x18] sm:$0xff]  ;;  %v2907_v22 = vld [vmem:[%s3987_s1 + $0x10] sm:$0xff]  ;;  %3998 = vst [vmem:[#allocation10_spill] sm:$0xff] %v3396_v27  ;;  %s2426_s21 = sshll.u32 %s4014_s30, 3 }
  0x35   : > { %v2906_v23 = vld [vmem:[%s3987_s1 + $0x8] sm:$0xff]  ;;  %v2905_v24 = vld [vmem:[%s3987_s1] sm:$0xff]  ;;  %v2923_v34 = vld [vmem:[#allocation4 + $0x50] sm:$0xf0]  ;;  %s400_s29 = scalar_lea.vmem %s3994_s8, %s2426_s21 }
  0x36   : > { %v2513_v33 = vld [vmem:[#allocation4 + $0x48] sm:$0xf]  ;;  %v2922_v35 = vld [vmem:[#allocation4 + $0x4c] sm:$0xf]  ;;  %v2515_v37 = vld [vmem:[#allocation4 + $0x54] sm:$0xf0] }
  0x37   : > { %v2514_v36 = vor.u32 %v2923_v34, %v2513_v33  ;;  %v2521_v38 = vld [vmem:[#allocation4 + $0x50] sm:$0xf]  ;;  %v2924_v39 = vld [vmem:[#allocation4 + $0x58] sm:$0xf0]  ;;  %v2518_v40 = vor.u32 %v2922_v35, %v2515_v37  ;;  %v2919_v47 = vld [vmem:[#allocation4 + $0x34] sm:$0xf] }
  0x38   : > { %529 = vmatpush.bf16.msra.mxu0 %v2911_v13  ;;  %v2522_v41 = vor.u32 %v2924_v39, %v2521_v38  ;;  %v2501_v45 = vld [vmem:[#allocation4 + $0x30] sm:$0xf]  ;;  %v2920_v46 = vld [vmem:[#allocation4 + $0x38] sm:$0xf0]  ;;  %v2503_v49 = vld [vmem:[#allocation4 + $0x3c] sm:$0xf0] }
  0x39   : > { %666 = vmatpush.bf16.msra.mxu1 %v2514_v36  ;;  %695 = vmatpush.bf16.msra.mxu2 %v2518_v40  ;;  %v2502_v48 = vor.u32 %v2920_v46, %v2501_v45  ;;  %v2509_v50 = vld [vmem:[#allocation4 + $0x38] sm:$0xf]  ;;  %v2921_v51 = vld [vmem:[#allocation4 + $0x40] sm:$0xf0]  ;;  %v2506_v52 = vor.u32 %v2919_v47, %v2503_v49  ;;  %v2916_v56 = vld [vmem:[#allocation4 + $0x1c] sm:$0xf] }
  0x3a   : > { %422 = vperm.xlu1 %3065, %v407_v14   ;;  %724 = vmatpush.bf16.msra.mxu3 %v2522_v41  ;;  %v2510_v53 = vor.u32 %v2921_v51, %v2509_v50  ;;  %v2489_v54 = vld [vmem:[#allocation4 + $0x18] sm:$0xf]  ;;  %v2917_v55 = vld [vmem:[#allocation4 + $0x20] sm:$0xf0]  ;;  %v2491_v58 = vld [vmem:[#allocation4 + $0x24] sm:$0xf0] }
  0x3b   : > { %416 = vperm.xlu0 %3064, %v405_v15   ;;  %428 = vperm.xlu2 %3066, %v409_v16   ;;  %v2490_v57 = vor.u32 %v2917_v55, %v2489_v54  ;;  %v2497_v59 = vld [vmem:[#allocation4 + $0x20] sm:$0xf]  ;;  %v2918_v60 = vld [vmem:[#allocation4 + $0x28] sm:$0xf0]  ;;  %v2494_v61 = vor.u32 %v2916_v56, %v2491_v58  ;;  %v2913_v1 = vld [vmem:[#allocation4 + $0x4] sm:$0xf] }
  0x3c   : > { %530 = vmatpush.bf16.msra.mxu0 %v2910_v17  ;;  %v2498_v62 = vor.u32 %v2918_v60, %v2497_v59  ;;  %v2477_v63 = vld [vmem:[#allocation4] sm:$0xf]  ;;  %v2914_v0 = vld [vmem:[#allocation4 + $0x8] sm:$0xf0]  ;;  %v2479_v3 = vld [vmem:[#allocation4 + $0xc] sm:$0xf0] }
  0x3d   : > { %667 = vmatpush.bf16.msra.mxu1 %v2502_v48  ;;  %696 = vmatpush.bf16.msra.mxu2 %v2506_v52  ;;  %v2478_v2 = vor.u32 %v2914_v0, %v2477_v63  ;;  %v2485_v4 = vld [vmem:[#allocation4 + $0x8] sm:$0xf]  ;;  %v2915_v5 = vld [vmem:[#allocation4 + $0x10] sm:$0xf0]  ;;  %v2482_v6 = vor.u32 %v2913_v1, %v2479_v3  ;;  %v2946_v12 = vld [vmem:[%s3989_s3 + $0xac] sm:$0xf] }
  0x3e   : > { %725 = vmatpush.bf16.msra.mxu3 %v2510_v53  ;;  %v2486_v7 = vor.u32 %v2915_v5, %v2485_v4  ;;  %v2621_v9 = vld [vmem:[%s3989_s3 + $0xa8] sm:$0xf]  ;;  %v2947_v10 = vld [vmem:[%s3989_s3 + $0xb0] sm:$0xf0]  ;;  %v2623_v13 = vld [vmem:[%s3989_s3 + $0xb4] sm:$0xf0] }
  0x3f   : > { %v3412_v11 = vor.u32 %v2947_v10, %v2621_v9  ;;  %v2609_v14 = vld [vmem:[%s3989_s3 + $0x90] sm:$0xf]  ;;  %v3425_v15 = vor.u32 %v2946_v12, %v2623_v13  ;;  %v2944_v16 = vld [vmem:[%s3989_s3 + $0x98] sm:$0xf0]  ;;  %v2617_v37 = vld [vmem:[%s3989_s3 + $0x98] sm:$0xf] }
  0x40   : > { %531 = vmatpush.bf16.msra.mxu0 %v2909_v18  ;;  %v3430_v17 = vor.u32 %v2944_v16, %v2609_v14  ;;  %v2943_v18 = vld [vmem:[%s3989_s3 + $0x94] sm:$0xf]  ;;  %v2948_v26 = vld [vmem:[%s3989_s3 + $0xb8] sm:$0xf0]  ;;  %v2945_v38 = vld [vmem:[%s3989_s3 + $0xa0] sm:$0xf0] }
  0x41   : > { %668 = vmatpush.bf16.msra.mxu1 %v2490_v57  ;;  %697 = vmatpush.bf16.msra.mxu2 %v2494_v61  ;;  %v2937_v39 = vld [vmem:[%s3989_s3 + $0x64] sm:$0xf]  ;;  %v3491_v40 = vor.u32 %v2945_v38, %v2617_v37  ;;  %v2587_v41 = vld [vmem:[%s3989_s3 + $0x6c] sm:$0xf0]  ;;  %v2605_v47 = vld [vmem:[%s3989_s3 + $0x80] sm:$0xf] }
  0x42   : > { %434 = vperm.xlu1 %3065, %v411_v19   ;;  %726 = vmatpush.bf16.msra.mxu3 %v2498_v62  ;;  %v2611_v19 = vld [vmem:[%s3989_s3 + $0x9c] sm:$0xf0]  ;;  %v2942_v48 = vld [vmem:[%s3989_s3 + $0x88] sm:$0xf0]  ;;  %v2575_v51 = vld [vmem:[%s3989_s3 + $0x54] sm:$0xf0] }
  0x43   : > { %431 = vperm.xlu0 %3064, %v410_v20   ;;  %v3441_v20 = vor.u32 %v2943_v18, %v2611_v19  ;;  %v2934_v49 = vld [vmem:[%s3989_s3 + $0x4c] sm:$0xf]  ;;  %v3522_v50 = vor.u32 %v2942_v48, %v2605_v47  ;;  %v2561_v52 = vld [vmem:[%s3989_s3 + $0x30] sm:$0xf]  ;;  %v2932_v53 = vld [vmem:[%s3989_s3 + $0x38] sm:$0xf0] }
  0x44   : > { %532 = vmatpush.bf16.msra.mxu0 %v2908_v21  ;;  %v2597_v21 = vld [vmem:[%s3989_s3 + $0x78] sm:$0xf]  ;;  %v3533_v54 = vor.u32 %v2934_v49, %v2575_v51  ;;  %v3535_v55 = vor.u32 %v2932_v53, %v2561_v52  ;;  %v2593_v58 = vld [vmem:[%s3989_s3 + $0x68] sm:$0xf]  ;;  %v2939_v59 = vld [vmem:[%s3989_s3 + $0x70] sm:$0xf0] }
  0x45   : > { %669 = vmatpush.bf16.msra.mxu1 %v2478_v2  ;;  %698 = vmatpush.bf16.msra.mxu2 %v2482_v6  ;;  %v2931_v60 = vld [vmem:[%s3989_s3 + $0x34] sm:$0xf]  ;;  %v3550_v61 = vor.u32 %v2939_v59, %v2593_v58  ;;  %v2563_v62 = vld [vmem:[%s3989_s3 + $0x3c] sm:$0xf0]  ;;  %v2549_v0 = vld [vmem:[%s3989_s3 + $0x18] sm:$0xf] }
  0x46   : > { %727 = vmatpush.bf16.msra.mxu3 %v2486_v7  ;;  %v3557_v63 = vor.u32 %v2931_v60, %v2563_v62  ;;  %v2929_v1 = vld [vmem:[%s3989_s3 + $0x20] sm:$0xf0]  ;;  %v2581_v2 = vld [vmem:[%s3989_s3 + $0x50] sm:$0xf]  ;;  %v2936_v4 = vld [vmem:[%s3989_s3 + $0x58] sm:$0xf0] }
  0x47   : > { %v3571_v3 = vor.u32 %v2929_v1, %v2549_v0  ;;  %v2928_v5 = vld [vmem:[%s3989_s3 + $0x1c] sm:$0xf]  ;;  %v2551_v6 = vld [vmem:[%s3989_s3 + $0x24] sm:$0xf0]  ;;  %v3582_v7 = vor.u32 %v2936_v4, %v2581_v2  ;;  %v2537_v10 = vld [vmem:[%s3989_s3] sm:$0xf] }
  0x48   : > { %533 = vmatpush.bf16.msra.mxu0 %v2907_v22  ;;  %v2941_v22 = vld [vmem:[%s3989_s3 + $0x80] sm:$0xf0]  ;;  %v3584_v9 = vor.u32 %v2928_v5, %v2551_v6  ;;  %v2926_v12 = vld [vmem:[%s3989_s3 + $0x8] sm:$0xf0]  ;;  %v2539_v16 = vld [vmem:[%s3989_s3 + $0xc] sm:$0xf0] }
  0x49   : > { %940 = vmatpush.bf16.msrb.mxu1 %v3412_v11  ;;  %953 = vmatpush.bf16.msrb.mxu2 %v3425_v15  ;;  %v2925_v13 = vld [vmem:[%s3989_s3 + $0x4] sm:$0xf]  ;;  %v3596_v14 = vor.u32 %v2926_v12, %v2537_v10  ;;  %v2569_v18 = vld [vmem:[%s3989_s3 + $0x38] sm:$0xf] }
  0x4a   : > { %v2933_v19 = vld [vmem:[%s3989_s3 + $0x40] sm:$0xf0] }
  0x4c   : > { %534 = vmatpush.bf16.msra.mxu0 %v2906_v23  ;;  %v3450_v23 = vor.u32 %v2941_v22, %v2597_v21  ;;  %v3610_v22 = vor.u32 %v2925_v13, %v2539_v16 }
  0x4d   : > { %941 = vmatpush.bf16.msrb.mxu1 %v3430_v17  ;;  %954 = vmatpush.bf16.msrb.mxu2 %v3441_v20 }
  0x50   : > { %535 = vmatpush.bf16.msra.mxu0 %v2905_v24 }
  0x51   : > { %942 = vmatpush.bf16.msrb.mxu1 %v3450_v23 }
  0x54   : > { %1034 = vmatpush.bf16.msrb.mxu0 %v3412_v11 }
  0x58   : > { %1035 = vmatpush.bf16.msrb.mxu0 %v3430_v17 }
  0x5c   : > { %1036 = vmatpush.bf16.msrb.mxu0 %v3450_v23 }
  0x8d   : > { %v426_v32 = vpop.permute.xlu2 %425 }
  0x8e   : > { %vm440_vm6 = vcmp.eq.s32.totalorder %v3396_v27, %v426_v32  ;;  %v2938_v32 = vld [vmem:[%s3989_s3 + $0x68] sm:$0xf0] }
  0x95   : > { %v429_v42 = vpop.permute.xlu2 %428 }
  0x96   : > { %vm441_vm7 = vcmp.eq.s32.totalorder %v3396_v27, %v429_v42  ;;  %v3498_v42 = vor.u32 %v2937_v39, %v2587_v41  ;;  %v577_v41 = vld [vmem:[%s3990_s4] sm:$0x7] }
  0x97   : > { %vm2471_vm8 = vmpackc.low %vm441_vm7, %vm440_vm6  ;;  %v580_v49 = vperm.slane %v577_v41, 1  ;;  %v3708_v51 = vperm.slane %v577_v41, 2 }
  0xa4   : > { %v420_v30 = vpop.permute.xlu1 %419 }
  0xa5   : > { %v414_v25 = vpop.permute.xlu0 %413  ;;  %vm438_vm3 = vcmp.eq.s32.totalorder %v3396_v27, %v420_v30  ;;  %v2599_v30 = vld [vmem:[%s3989_s3 + $0x84] sm:$0xf0] }
  0xa6   : > { %vm436_vm1 = vcmp.eq.s32.totalorder %v3396_v27, %v414_v25  ;;  %v2629_v25 = vld [vmem:[%s3989_s3 + $0xb0] sm:$0xf] }
  0xac   : > { %v423_v31 = vpop.permute.xlu1 %422 }
  0xad   : > { %v417_v28 = vpop.permute.xlu0 %416  ;;  %vm439_vm4 = vcmp.eq.s32.totalorder %v3396_v27, %v423_v31  ;;  %v2585_v31 = vld [vmem:[%s3989_s3 + $0x60] sm:$0xf] }
  0xae   : > { %vm437_vm0 = vcmp.eq.s32.totalorder %v3396_v27, %v417_v28  ;;  %vm2469_vm5 = vmpackc.low %vm439_vm4, %vm438_vm3  ;;  %v2940_v28 = vld [vmem:[%s3989_s3 + $0x7c] sm:$0xf]  ;;  %v3476_v34 = vor.u32 %v2938_v32, %v2585_v31  ;;  %v2545_v31 = vld [vmem:[%s3989_s3 + $0x8] sm:$0xf] }
  0xaf   : > { %vm2467_vm2 = vmpackc.low %vm437_vm0, %vm436_vm1  ;;  %v3474_v33 = vor.u32 %v2940_v28, %v2599_v30  ;;  %v2557_v28 = vld [vmem:[%s3989_s3 + $0x20] sm:$0xf]  ;;  %v2930_v30 = vld [vmem:[%s3989_s3 + $0x28] sm:$0xf0] }
  0xb0   : > { %2468 = vmatmul.msk.bf16.vlgmr.msra.gmra.mxu0 %vm2467_vm2, %v3253_v29  ;;  %943 = vmatpush.bf16.msrb.mxu1 %v3476_v34  ;;  %v3636_v32 = vor.u32 %v2930_v30, %v2557_v28 }
  0xb1   : > { %955 = vmatpush.bf16.msrb.mxu2 %v3474_v33  ;;  %1037 = vmatpush.bf16.msrb.mxu0 %v3476_v34 }
  0xb4   : > { %v435_v43 = vpop.permute.xlu1 %434 }
  0xb5   : > { %v432_v44 = vpop.permute.xlu0 %431  ;;  %vm443_vm9 = vcmp.eq.s32.totalorder %v3396_v27, %v435_v43  ;;  %v2573_v43 = vld [vmem:[%s3989_s3 + $0x48] sm:$0xf]  ;;  %956 = vmatpush.bf16.msrb.mxu2 %v3498_v42 }
  0xb6   : > { %vm442_vm10 = vcmp.eq.s32.totalorder %v3396_v27, %v432_v44  ;;  %v2935_v44 = vld [vmem:[%s3989_s3 + $0x50] sm:$0xf0] }
  0xb7   : > { %vm2473_vm11 = vmpackc.low %vm443_vm9, %vm442_vm10  ;;  %v3509_v45 = vor.u32 %v2935_v44, %v2573_v43  ;;  %v579_v44 = vperm.slane %v577_v41, 0 }
  0xb9   : > { %944 = vmatpush.bf16.msrb.mxu1 %v3509_v45  ;;  %1038 = vmatpush.bf16.msrb.mxu0 %v3509_v45 }
  0xba   : > { %957 = vmatpush.bf16.msrb.mxu2 %v3533_v54 }
  0xbd   : > { %945 = vmatpush.bf16.msrb.mxu1 %v3535_v55  ;;  %1039 = vmatpush.bf16.msrb.mxu0 %v3535_v55 }
  0xbe   : > { %958 = vmatpush.bf16.msrb.mxu2 %v3557_v63 }
  0xc0   : > { %2470 = vmatmul.msk.bf16.gmra.mxu0 %vm2469_vm5, %v3253_v29 }
  0xc1   : > { %946 = vmatpush.bf16.msrb.mxu1 %v3571_v3  ;;  %1040 = vmatpush.bf16.msrb.mxu0 %v3571_v3 }
  0xc2   : > { %959 = vmatpush.bf16.msrb.mxu2 %v3584_v9 }
  0xc5   : > { %947 = vmatpush.bf16.msrb.mxu1 %v3596_v14  ;;  %1041 = vmatpush.bf16.msrb.mxu0 %v3596_v14 }
  0xc6   : > { %960 = vmatpush.bf16.msrb.mxu2 %v3610_v22 }
  0xc9   : > { %1141 = vmatpush.bf16.msra.mxu0 %v3425_v15 }
  0xcd   : > { %1142 = vmatpush.bf16.msra.mxu0 %v3441_v20 }
  0xd0   : > { %2472 = vmatmul.msk.bf16.gmra.mxu0 %vm2471_vm8, %v3253_v29 }
  0xd1   : > { %1143 = vmatpush.bf16.msra.mxu0 %v3474_v33 }
  0xd5   : > { %1144 = vmatpush.bf16.msra.mxu0 %v3498_v42 }
  0xd9   : > { %1145 = vmatpush.bf16.msra.mxu0 %v3533_v54 }
  0xdd   : > { %1146 = vmatpush.bf16.msra.mxu0 %v3557_v63 }
  0xe0   : > { %2474 = vmatmul.msk.bf16.gmra.mxu0 %vm2473_vm11, %v3253_v29  ;;  %v3463_v29 = vor.u32 %v2948_v26, %v2629_v25 }
  0xe1   : > { %1147 = vmatpush.bf16.msra.mxu0 %v3584_v9 }
  0xe2   : > { %966 = vmatpush.bf16.msrb.mxu3 %v3463_v29 }
  0xe5   : > { %1148 = vmatpush.bf16.msra.mxu0 %v3610_v22 }
  0xe6   : > { %967 = vmatpush.bf16.msrb.mxu3 %v3491_v40 }
  0xea   : > { %968 = vmatpush.bf16.msrb.mxu3 %v3522_v50 }
  0xee   : > { %969 = vmatpush.bf16.msrb.mxu3 %v3550_v61 }
  0xf2   : > { %970 = vmatpush.bf16.msrb.mxu3 %v3582_v7 }
 0x12d   : > { %v537_v24 = vpop.f32.mrf.mxu0 }
 0x135   : > { %v539_v35 = vpop.f32.mrf.mxu0 }
 0x136   : > { %v557_v36 = vpack.c.bf16 %v539_v35, %v537_v24  ;;  %v3612_v24 = vor.u32 %v2933_v19, %v2569_v18  ;;  %v2927_v35 = vld [vmem:[%s3989_s3 + $0x10] sm:$0xf0] }
 0x138   : > { %2523 = vmatmul.msk.bf16.vlgmr.msra.gmra.mxu1 %vm649_vm12, %v557_v36  ;;  %2527 = vmatmul.msk.bf16.vlgmr.msra.gmra.mxu2 %vm649_vm12, %v557_v36 }
 0x139   : > { %2531 = vmatmul.msk.bf16.vlgmr.msra.gmra.mxu3 %vm649_vm12, %v557_v36  ;;  %1047 = vmatpush.bf16.msra.mxu1 %v3425_v15  ;;  %v3644_v36 = vor.u32 %v2927_v35, %v2545_v31 }
 0x13a   : > { %971 = vmatpush.bf16.msrb.mxu3 %v3612_v24  ;;  %1060 = vmatpush.bf16.msra.mxu2 %v3463_v29 }
 0x13d   : > { %v542_v46 = vpop.f32.mrf.mxu0  ;;  %1048 = vmatpush.bf16.msra.mxu1 %v3441_v20 }
 0x13e   : > { %1061 = vmatpush.bf16.msra.mxu2 %v3491_v40  ;;  %972 = vmatpush.bf16.msrb.mxu3 %v3636_v32 }
 0x141   : > { %1049 = vmatpush.bf16.msra.mxu1 %v3474_v33 }
 0x142   : > { %1062 = vmatpush.bf16.msra.mxu2 %v3522_v50  ;;  %973 = vmatpush.bf16.msrb.mxu3 %v3644_v36 }
 0x145   : > { %v544_v56 = vpop.f32.mrf.mxu0  ;;  %1050 = vmatpush.bf16.msra.mxu1 %v3498_v42 }
 0x146   : > { %v558_v57 = vpack.c.bf16 %v544_v56, %v542_v46  ;;  %1063 = vmatpush.bf16.msra.mxu2 %v3550_v61  ;;  %1128 = vmatpush.bf16.msra.mxu3 %v3412_v11 }
 0x148   : > { %2524 = vmatmul.msk.bf16.gmra.mxu1 %vm649_vm12, %v558_v57  ;;  %2528 = vmatmul.msk.bf16.gmra.mxu2 %vm649_vm12, %v558_v57 }
 0x149   : > { %2532 = vmatmul.msk.bf16.gmra.mxu3 %vm649_vm12, %v558_v57  ;;  %1051 = vmatpush.bf16.msra.mxu1 %v3533_v54 }
 0x14a   : > { %1064 = vmatpush.bf16.msra.mxu2 %v3582_v7  ;;  %1129 = vmatpush.bf16.msra.mxu3 %v3430_v17 }
 0x14d   : > { %v547_v21 = vpop.f32.mrf.mxu0  ;;  %1052 = vmatpush.bf16.msra.mxu1 %v3557_v63 }
 0x14e   : > { %1065 = vmatpush.bf16.msra.mxu2 %v3612_v24  ;;  %1130 = vmatpush.bf16.msra.mxu3 %v3450_v23 }
 0x151   : > { %1053 = vmatpush.bf16.msra.mxu1 %v3584_v9 }
 0x152   : > { %1066 = vmatpush.bf16.msra.mxu2 %v3636_v32  ;;  %1131 = vmatpush.bf16.msra.mxu3 %v3476_v34 }
 0x155   : > { %v549_v25 = vpop.f32.mrf.mxu0  ;;  %1054 = vmatpush.bf16.msra.mxu1 %v3610_v22 }
 0x156   : > { %v559_v26 = vpack.c.bf16 %v549_v25, %v547_v21  ;;  %1067 = vmatpush.bf16.msra.mxu2 %v3644_v36  ;;  %1132 = vmatpush.bf16.msra.mxu3 %v3509_v45 }
 0x158   : > { %2525 = vmatmul.msk.bf16.gmra.mxu1 %vm649_vm12, %v559_v26  ;;  %2529 = vmatmul.msk.bf16.gmra.mxu2 %vm649_vm12, %v559_v26 }
 0x159   : > { %2533 = vmatmul.msk.bf16.gmra.mxu3 %vm649_vm12, %v559_v26 }
 0x15a   : > { %1133 = vmatpush.bf16.msra.mxu3 %v3535_v55 }
 0x15d   : > { %v552_v37 = vpop.f32.mrf.mxu0 }
 0x15e   : > { %1134 = vmatpush.bf16.msra.mxu3 %v3571_v3 }
 0x162   : > { %1135 = vmatpush.bf16.msra.mxu3 %v3596_v14 }
 0x165   : > { %v554_v38 = vpop.f32.mrf.mxu0 }
 0x166   : > { %v560_v39 = vpack.c.bf16 %v554_v38, %v552_v37 }
 0x168   : > { %2526 = vmatmul.msk.bf16.gmra.mxu1 %vm649_vm12, %v560_v39  ;;  %2530 = vmatmul.msk.bf16.gmra.mxu2 %vm649_vm12, %v560_v39 }
 0x169   : > { %2534 = vmatmul.msk.bf16.gmra.mxu3 %vm649_vm12, %v560_v39 }
 0x178   : > { %948 = vmatmul.bf16.vlgmr.msrb.gmra.mxu1 %v3252_v8  ;;  %961 = vmatmul.bf16.vlgmr.msrb.gmra.mxu2 %v3252_v8 }
 0x179   : > { %974 = vmatmul.bf16.vlgmr.msrb.gmra.mxu3 %v3252_v8  ;;  %1154 = vmatpush.bf16.msrb.mxu1 %v3463_v29 }
 0x17a   : > { %1222 = vmatpush.bf16.msrb.mxu2 %v3412_v11  ;;  %1235 = vmatpush.bf16.msrb.mxu3 %v3425_v15 }
 0x17d   : > { %1155 = vmatpush.bf16.msrb.mxu1 %v3491_v40 }
 0x17e   : > { %1223 = vmatpush.bf16.msrb.mxu2 %v3430_v17  ;;  %1236 = vmatpush.bf16.msrb.mxu3 %v3441_v20 }
 0x181   : > { %1156 = vmatpush.bf16.msrb.mxu1 %v3522_v50 }
 0x182   : > { %1224 = vmatpush.bf16.msrb.mxu2 %v3450_v23  ;;  %1237 = vmatpush.bf16.msrb.mxu3 %v3474_v33 }
 0x185   : > { %1157 = vmatpush.bf16.msrb.mxu1 %v3550_v61 }
 0x186   : > { %1225 = vmatpush.bf16.msrb.mxu2 %v3476_v34  ;;  %1238 = vmatpush.bf16.msrb.mxu3 %v3498_v42 }
 0x189   : > { %1158 = vmatpush.bf16.msrb.mxu1 %v3582_v7 }
 0x18a   : > { %1226 = vmatpush.bf16.msrb.mxu2 %v3509_v45  ;;  %1239 = vmatpush.bf16.msrb.mxu3 %v3533_v54 }
 0x18d   : > { %1159 = vmatpush.bf16.msrb.mxu1 %v3612_v24 }
 0x18e   : > { %1227 = vmatpush.bf16.msrb.mxu2 %v3535_v55  ;;  %1240 = vmatpush.bf16.msrb.mxu3 %v3557_v63 }
 0x191   : > { %1160 = vmatpush.bf16.msrb.mxu1 %v3636_v32 }
 0x192   : > { %1228 = vmatpush.bf16.msrb.mxu2 %v3571_v3  ;;  %1241 = vmatpush.bf16.msrb.mxu3 %v3584_v9 }
 0x195   : > { %1161 = vmatpush.bf16.msrb.mxu1 %v3644_v36 }
 0x196   : > { %1229 = vmatpush.bf16.msrb.mxu2 %v3596_v14  ;;  %1242 = vmatpush.bf16.msrb.mxu3 %v3610_v22 }
 0x1b5   : > { %v671_v8 = vpop.f32.mrf.mxu1 }
 0x1bb   : > { %v700_v43 = vpop.f32.mrf.mxu2 }
 0x1bc   : > { %v3704_v46 = vpop.f32.mrf.mxu3 }
 0x1bd   : > { %v673_v47 = vpop.f32.mrf.mxu1 }
 0x1be   : > { %v3706_v48 = vadd.f32 %v673_v47, %v579_v44 }
 0x1c3   : > { %v702_v52 = vpop.f32.mrf.mxu2 }
 0x1c4   : > { %v3710_v53 = vadd.f32 %v702_v52, %v580_v49  ;;  %v731_v56 = vpop.f32.mrf.mxu3 }
 0x1c5   : > { %v3713_v57 = vadd.f32 %v731_v56, %v3708_v51  ;;  %v676_v58 = vpop.f32.mrf.mxu1 }
 0x1c6   : > { %v3715_v59 = vadd.f32 %v676_v58, %v579_v44 }
 0x1cb   : > { %v705_v60 = vpop.f32.mrf.mxu2 }
 0x1cc   : > { %v3717_v62 = vadd.f32 %v705_v60, %v580_v49  ;;  %v734_v0 = vpop.f32.mrf.mxu3 }
 0x1cd   : > { %v3720_v1 = vadd.f32 %v734_v0, %v3708_v51  ;;  %v678_v2 = vpop.f32.mrf.mxu1 }
 0x1ce   : > { %v3722_v4 = vadd.f32 %v678_v2, %v579_v44  ;;  %v672_v2 = vadd.f32 %v671_v8, %v579_v44 }
 0x1d3   : > { %v707_v5 = vpop.f32.mrf.mxu2 }
 0x1d4   : > { %v3724_v6 = vadd.f32 %v707_v5, %v580_v49  ;;  %v736_v10 = vpop.f32.mrf.mxu3 }
 0x1d5   : > { %v3727_v12 = vadd.f32 %v736_v10, %v3708_v51  ;;  %v681_v13 = vpop.f32.mrf.mxu1 }
 0x1d6   : > { %v3729_v16 = vadd.f32 %v681_v13, %v579_v44 }
 0x1db   : > { %v710_v18 = vpop.f32.mrf.mxu2 }
 0x1dc   : > { %v3731_v19 = vadd.f32 %v710_v18, %v580_v49  ;;  %v739_v21 = vpop.f32.mrf.mxu3 }
 0x1dd   : > { %v3734_v25 = vadd.f32 %v739_v21, %v3708_v51  ;;  %v683_v26 = vpop.f32.mrf.mxu1 }
 0x1de   : > { %v3736_v28 = vadd.f32 %v683_v26, %v579_v44 }
 0x1e3   : > { %v712_v30 = vpop.f32.mrf.mxu2 }
 0x1e4   : > { %v3738_v31 = vadd.f32 %v712_v30, %v580_v49  ;;  %v741_v35 = vpop.f32.mrf.mxu3  ;;  %v701_v30 = vadd.f32 %v700_v43, %v580_v49  ;;  %v3760_v43 = vld [vmem:[%s3991_s5] ss:$0 sm:$0xff] }
 0x1e5   : > { %v3741_v37 = vadd.f32 %v741_v35, %v3708_v51  ;;  %v686_v38 = vpop.f32.mrf.mxu1 }
 0x1e6   : > { %v3743_v39 = vadd.f32 %v686_v38, %v579_v44 }
 0x1e8   : > { %3999 = vst [vmem:[#allocation11_spill] sm:$0xff] %v3743_v39 }
 0x1eb   : > { %v715_v41 = vpop.f32.mrf.mxu2 }
 0x1ec   : > { %v3745_v47 = vadd.f32 %v715_v41, %v580_v49  ;;  %v744_v52 = vpop.f32.mrf.mxu3 }
 0x1ed   : > { %v3748_v56 = vadd.f32 %v744_v52, %v3708_v51  ;;  %v688_v58 = vpop.f32.mrf.mxu1 }
 0x1ee   : > { %v3750_v60 = vadd.f32 %v688_v58, %v579_v44 }
 0x1ef   : > { %4000 = vst [vmem:[#allocation12_spill] sm:$0xff] %v3748_v56 }
 0x1f0   : > { %4001 = vst [vmem:[#allocation13_spill] sm:$0xff] %v3750_v60 }
 0x1f3   : > { %v717_v0 = vpop.f32.mrf.mxu2 }
 0x1f4   : > { %v3752_v5 = vadd.f32 %v717_v0, %v580_v49  ;;  %v746_v10 = vpop.f32.mrf.mxu3 }
 0x1f5   : > { %v3755_v13 = vadd.f32 %v746_v10, %v3708_v51  ;;  %v949_v18 = vpop.f32.mrf.mxu1 }
 0x1f6   : > { %4002 = vst [vmem:[#allocation14_spill] sm:$0xff] %v3752_v5  ;;  %v979_v21 = vadd.f32 %v949_v18, %v672_v2 }
 0x1f7   : > { %4003 = vst [vmem:[#allocation15_spill] sm:$0xff] %v3755_v13 }
 0x1f8   : > { %v2631_v26 = vmul.f32 -1.442695, %v979_v21 }
 0x1fa   : > { %3069 = vpow2.f32 %v2631_v26 }
 0x1fb   : > { %v962_v35 = vpop.f32.mrf.mxu2 }
 0x1fc   : > { %v980_v38 = vadd.f32 %v962_v35, %v701_v30  ;;  %v975_v41 = vpop.f32.mrf.mxu3 }
 0x1fd   : > { %v951_v52 = vpop.f32.mrf.mxu1  ;;  %v1019_v35 = vadd.f32 %v3760_v43, %v975_v41 }
 0x1fe   : > { %v2632_v27 = vmul.f32 -1.442695, %v980_v38 }
 0x200   : > { %v3070_v58 = vpop.eup %3069  ;;  %3071 = vpow2.f32 %v2632_v27 }
 0x201   : > { %v987_v60 = vadd.f32 1.0, %v3070_v58 }
 0x203   : > { %3073 = vrcp.f32 %v987_v60  ;;  %v964_v8 = vpop.f32.mrf.mxu2  ;;  %v1000_v2 = vand.u32 2147483648, %v987_v60  ;;  %v998_v21 = vand.u32 2147483647, %v987_v60  ;;  %vm994_vm14 = vweird.f32 %v987_v60 }
 0x204   : > { %v977_v44 = vpop.f32.mrf.mxu3 }
 0x205   : > { %v1001_v38 = vor.u32 1.1754944e-38, %v1000_v2  ;;  %vm999_vm0 = vcmp.eq.f32.partialorder %v998_v21, 8.507059e+37  ;;  %v730_v44 = vadd.f32 %v3704_v46, %v3708_v51 }
 0x206   : > { %v3072_v0 = vpop.eup %3071 }
 0x207   : > { %v988_v5 = vadd.f32 1.0, %v3072_v0 }
 0x209   : > { %v3074_v10 = vpop.eup %3073  ;;  %3075 = vrcp.f32 %v988_v5  ;;  %v1015_v39 = vand.u32 2147483648, %v988_v5  ;;  %vm1009_vm2 = vweird.f32 %v988_v5 }
 0x20a   : > { %v990_v13 = vmul.f32 %v3074_v10, %v987_v60  ;;  %vm995_vm13 = vweird.f32 %v3074_v10  ;;  %v1013_v60 = vand.u32 2147483647, %v988_v5 }
 0x20b   : > { %vm996_vm15 = vmor %vm994_vm14, %vm995_vm13  ;;  %v1016_v2 = vor.u32 1.1754944e-38, %v1015_v39 }
 0x20c   : > { %v991_v49 = vsub.f32 1.0, %v990_v13  ;;  %vm1014_vm4 = vcmp.eq.f32.partialorder %v1013_v60, 8.507059e+37 }
 0x20e   : > { %v992_v18 = vmul.f32 %v3074_v10, %v991_v49 }
 0x20f   : > { %v3076_v27 = vpop.eup %3075 }
 0x210   : > { %v1005_v26 = vmul.f32 %v3076_v27, %v988_v5  ;;  %v993_v30 = vadd.f32 %v3074_v10, %v992_v18  ;;  %vm1010_vm1 = vweird.f32 %v3076_v27 }
 0x211   : > { %vm1011_vm3 = vmor %vm1009_vm2, %vm1010_vm1 }
 0x212   : > { %v1006_v52 = vsub.f32 1.0, %v1005_v26  ;;  %v997_v58 = vsel %vm996_vm15, %v3074_v10, %v993_v30 }
 0x213   : > { %v1002_v8 = vsel %vm999_vm0, %v1001_v38, %v997_v58 }
 0x214   : > { %v1020_v13 = vmul.f32 %v1019_v35, %v1002_v8  ;;  %v1007_v0 = vmul.f32 %v3076_v27, %v1006_v52 }
 0x216   : > { %v1021_v49 = vadd.f32 %v1020_v13, %v730_v44  ;;  %v1008_v56 = vadd.f32 %v3076_v27, %v1007_v0 }
 0x218   : > { %3077 = vtanh.f32 %v1021_v49  ;;  %v1012_v41 = vsel %vm1011_vm3, %v3076_v27, %v1008_v56 }
 0x219   : > { %v1017_v21 = vsel %vm1014_vm4, %v1016_v2, %v1012_v41 }
 0x21e   : > { %v3078_v18 = vpop.eup %3077 }
 0x21f   : > { %v1023_v10 = vsub.f32 0.0, %v3078_v18 }
 0x221   : > { %v1024_v26 = vmul.f32 %v1023_v10, %v1017_v21 }
 0x223   : > { %v3765_v30 = vadd.f32 %v3078_v18, %v1024_v26 }
 0x225   : > { %v1033_v46 = vpack.c.bf16 %v3765_v30, %v3765_v30 }
 0x227   : > { %1042 = vmatmul.bf16.vlgmr.msrb.gmra.mxu0 %v1033_v46  ;;  %1055 = vmatmul.bf16.vlgmr.msra.gmra.mxu1 %v1033_v46 }
 0x228   : > { %1068 = vmatmul.bf16.vlgmr.msra.gmra.mxu2 %v1033_v46  ;;  %1248 = vmatpush.bf16.msrb.mxu0 %v3463_v29 }
 0x229   : > { %1316 = vmatpush.bf16.msra.mxu1 %v3412_v11  ;;  %1329 = vmatpush.bf16.msra.mxu2 %v3425_v15 }
 0x22c   : > { %1249 = vmatpush.bf16.msrb.mxu0 %v3491_v40 }
 0x22d   : > { %1317 = vmatpush.bf16.msra.mxu1 %v3430_v17  ;;  %1330 = vmatpush.bf16.msra.mxu2 %v3441_v20 }
 0x230   : > { %1250 = vmatpush.bf16.msrb.mxu0 %v3522_v50 }
 0x231   : > { %1318 = vmatpush.bf16.msra.mxu1 %v3450_v23  ;;  %1331 = vmatpush.bf16.msra.mxu2 %v3474_v33 }
 0x234   : > { %1251 = vmatpush.bf16.msrb.mxu0 %v3550_v61 }
 0x235   : > { %1319 = vmatpush.bf16.msra.mxu1 %v3476_v34  ;;  %1332 = vmatpush.bf16.msra.mxu2 %v3498_v42 }
 0x238   : > { %1252 = vmatpush.bf16.msrb.mxu0 %v3582_v7 }
 0x239   : > { %1320 = vmatpush.bf16.msra.mxu1 %v3509_v45  ;;  %1333 = vmatpush.bf16.msra.mxu2 %v3533_v54 }
 0x23c   : > { %1253 = vmatpush.bf16.msrb.mxu0 %v3612_v24 }
 0x23d   : > { %1321 = vmatpush.bf16.msra.mxu1 %v3535_v55  ;;  %1334 = vmatpush.bf16.msra.mxu2 %v3557_v63 }
 0x240   : > { %1254 = vmatpush.bf16.msrb.mxu0 %v3636_v32 }
 0x241   : > { %1322 = vmatpush.bf16.msra.mxu1 %v3571_v3  ;;  %1335 = vmatpush.bf16.msra.mxu2 %v3584_v9 }
 0x244   : > { %1255 = vmatpush.bf16.msrb.mxu0 %v3644_v36 }
 0x245   : > { %1323 = vmatpush.bf16.msra.mxu1 %v3596_v14  ;;  %1336 = vmatpush.bf16.msra.mxu2 %v3610_v22 }
 0x2a4   : > { %v1043_v51 = vpop.f32.mrf.mxu0  ;;  %v1056_v39 = vpop.f32.mrf.mxu1 }
 0x2a5   : > { %v1073_v56 = vadd.f32 %v1043_v51, %v3706_v48  ;;  %v1074_v5 = vadd.f32 %v1056_v39, %v3710_v53 }
 0x2a7   : > { %v2633_v27 = vmul.f32 -1.442695, %v1073_v56  ;;  %v2634_v35 = vmul.f32 -1.442695, %v1074_v5 }
 0x2a9   : > { %3079 = vpow2.f32 %v2633_v27 }
 0x2aa   : > { %3081 = vpow2.f32 %v2634_v35 }
 0x2ab   : > { %v1069_v38 = vpop.f32.mrf.mxu2 }
 0x2ac   : > { %v1045_v52 = vpop.f32.mrf.mxu0  ;;  %v1058_v58 = vpop.f32.mrf.mxu1  ;;  %v1113_v56 = vadd.f32 %v3760_v43, %v1069_v38 }
 0x2af   : > { %v3080_v8 = vpop.eup %3079 }
 0x2b0   : > { %v3082_v44 = vpop.eup %3081  ;;  %v1081_v13 = vadd.f32 1.0, %v3080_v8 }
 0x2b1   : > { %v1082_v0 = vadd.f32 1.0, %v3082_v44 }
 0x2b2   : > { %3083 = vrcp.f32 %v1081_v13  ;;  %v1094_v53 = vand.u32 2147483648, %v1081_v13  ;;  %v1092_v21 = vand.u32 2147483647, %v1081_v13  ;;  %vm1088_vm6 = vweird.f32 %v1081_v13 }
 0x2b3   : > { %3085 = vrcp.f32 %v1082_v0  ;;  %v1071_v49 = vpop.f32.mrf.mxu2  ;;  %v1109_v8 = vand.u32 2147483648, %v1082_v0  ;;  %vm1103_vm10 = vweird.f32 %v1082_v0  ;;  %v1107_v44 = vand.u32 2147483647, %v1082_v0 }
 0x2b4   : > { %v1095_v51 = vor.u32 1.1754944e-38, %v1094_v53  ;;  %vm1093_vm8 = vcmp.eq.f32.partialorder %v1092_v21, 8.507059e+37 }
 0x2b5   : > { %vm1108_vm12 = vcmp.eq.f32.partialorder %v1107_v44, 8.507059e+37 }
 0x2b8   : > { %v3084_v60 = vpop.eup %3083 }
 0x2b9   : > { %v3086_v41 = vpop.eup %3085  ;;  %v1084_v18 = vmul.f32 %v3084_v60, %v1081_v13  ;;  %vm1089_vm5 = vweird.f32 %v3084_v60 }
 0x2ba   : > { %v1099_v2 = vmul.f32 %v3086_v41, %v1082_v0  ;;  %vm1090_vm7 = vmor %vm1088_vm6, %vm1089_vm5  ;;  %vm1104_vm9 = vweird.f32 %v3086_v41 }
 0x2bb   : > { %v1085_v48 = vsub.f32 1.0, %v1084_v18  ;;  %vm1105_vm11 = vmor %vm1103_vm10, %vm1104_vm9  ;;  %v1110_v18 = vor.u32 1.1754944e-38, %v1109_v8 }
 0x2bc   : > { %v1100_v46 = vsub.f32 1.0, %v1099_v2 }
 0x2bd   : > { %v1086_v10 = vmul.f32 %v3084_v60, %v1085_v48 }
 0x2be   : > { %v1101_v35 = vmul.f32 %v3086_v41, %v1100_v46 }
 0x2bf   : > { %v1087_v26 = vadd.f32 %v3084_v60, %v1086_v10 }
 0x2c0   : > { %v1102_v58 = vadd.f32 %v3086_v41, %v1101_v35 }
 0x2c1   : > { %v1091_v39 = vsel %vm1090_vm7, %v3084_v60, %v1087_v26 }
 0x2c2   : > { %v1096_v5 = vsel %vm1093_vm8, %v1095_v51, %v1091_v39  ;;  %v1106_v13 = vsel %vm1105_vm11, %v3086_v41, %v1102_v58 }
 0x2c3   : > { %v1114_v27 = vmul.f32 %v1113_v56, %v1096_v5  ;;  %v1111_v48 = vsel %vm1108_vm12, %v1110_v18, %v1106_v13 }
 0x2c5   : > { %v1115_v52 = vadd.f32 %v1114_v27, %v3713_v57 }
 0x2c7   : > { %3087 = vtanh.f32 %v1115_v52 }
 0x2cd   : > { %v3088_v49 = vpop.eup %3087 }
 0x2ce   : > { %v1117_v60 = vsub.f32 %v3765_v30, %v3088_v49 }
 0x2d0   : > { %v1118_v38 = vmul.f32 %v1117_v60, %v1111_v48 }
 0x2d2   : > { %v3798_v2 = vadd.f32 %v3088_v49, %v1118_v38 }
 0x2d4   : > { %v1127_v57 = vpack.c.bf16 %v3798_v2, %v3798_v2 }
 0x2d6   : > { %1136 = vmatmul.bf16.vlgmr.msra.gmra.mxu3 %v1127_v57  ;;  %1149 = vmatmul.bf16.vlgmr.msra.gmra.mxu0 %v1127_v57 }
 0x2d7   : > { %1162 = vmatmul.bf16.vlgmr.msrb.gmra.mxu1 %v1127_v57  ;;  %1342 = vmatpush.bf16.msra.mxu3 %v3463_v29 }
 0x2d8   : > { %1410 = vmatpush.bf16.msra.mxu0 %v3412_v11  ;;  %1423 = vmatpush.bf16.msrb.mxu1 %v3425_v15 }
 0x2db   : > { %1343 = vmatpush.bf16.msra.mxu3 %v3491_v40 }
 0x2dc   : > { %1411 = vmatpush.bf16.msra.mxu0 %v3430_v17  ;;  %1424 = vmatpush.bf16.msrb.mxu1 %v3441_v20 }
 0x2df   : > { %1344 = vmatpush.bf16.msra.mxu3 %v3522_v50 }
 0x2e0   : > { %1412 = vmatpush.bf16.msra.mxu0 %v3450_v23  ;;  %1425 = vmatpush.bf16.msrb.mxu1 %v3474_v33 }
 0x2e3   : > { %1345 = vmatpush.bf16.msra.mxu3 %v3550_v61 }
 0x2e4   : > { %1413 = vmatpush.bf16.msra.mxu0 %v3476_v34  ;;  %1426 = vmatpush.bf16.msrb.mxu1 %v3498_v42 }
 0x2e7   : > { %1346 = vmatpush.bf16.msra.mxu3 %v3582_v7 }
 0x2e8   : > { %1414 = vmatpush.bf16.msra.mxu0 %v3509_v45  ;;  %1427 = vmatpush.bf16.msrb.mxu1 %v3533_v54 }
 0x2eb   : > { %1347 = vmatpush.bf16.msra.mxu3 %v3612_v24 }
 0x2ec   : > { %1415 = vmatpush.bf16.msra.mxu0 %v3535_v55  ;;  %1428 = vmatpush.bf16.msrb.mxu1 %v3557_v63 }
 0x2ef   : > { %1348 = vmatpush.bf16.msra.mxu3 %v3636_v32 }
 0x2f0   : > { %1416 = vmatpush.bf16.msra.mxu0 %v3571_v3  ;;  %1429 = vmatpush.bf16.msrb.mxu1 %v3584_v9 }
 0x2f3   : > { %1349 = vmatpush.bf16.msra.mxu3 %v3644_v36 }
 0x2f4   : > { %1417 = vmatpush.bf16.msra.mxu0 %v3596_v14  ;;  %1430 = vmatpush.bf16.msrb.mxu1 %v3610_v22 }
 0x353   : > { %v1150_v0 = vpop.f32.mrf.mxu0 }
 0x354   : > { %v1168_v41 = vadd.f32 %v1150_v0, %v3717_v62  ;;  %v1163_v53 = vpop.f32.mrf.mxu1 }
 0x355   : > { %v1207_v57 = vadd.f32 %v3760_v43, %v1163_v53 }
 0x356   : > { %v2636_v10 = vmul.f32 -1.442695, %v1168_v41 }
 0x358   : > { %3089 = vpow2.f32 %v2636_v10 }
 0x359   : > { %v1137_v21 = vpop.f32.mrf.mxu3 }
 0x35a   : > { %v1167_v26 = vadd.f32 %v1137_v21, %v3715_v59 }
 0x35b   : > { %v1152_v46 = vpop.f32.mrf.mxu0 }
 0x35c   : > { %v2635_v51 = vmul.f32 -1.442695, %v1167_v26  ;;  %v1165_v39 = vpop.f32.mrf.mxu1 }
 0x35e   : > { %3091 = vpow2.f32 %v2635_v51  ;;  %v3090_v56 = vpop.eup %3089 }
 0x35f   : > { %v1176_v35 = vadd.f32 1.0, %v3090_v56 }
 0x361   : > { %v1139_v5 = vpop.f32.mrf.mxu3  ;;  %v1203_v51 = vand.u32 2147483648, %v1176_v35  ;;  %vm1197_vm2 = vweird.f32 %v1176_v35  ;;  %v1201_v39 = vand.u32 2147483647, %v1176_v35 }
 0x363   : > { %vm1202_vm4 = vcmp.eq.f32.partialorder %v1201_v39, 8.507059e+37 }
 0x364   : > { %v3092_v27 = vpop.eup %3091 }
 0x365   : > { %v1175_v52 = vadd.f32 1.0, %v3092_v27  ;;  %v1204_v27 = vor.u32 1.1754944e-38, %v1203_v51 }
 0x367   : > { %3093 = vrcp.f32 %v1175_v52  ;;  %v1188_v49 = vand.u32 2147483648, %v1175_v52  ;;  %v1186_v59 = vand.u32 2147483647, %v1175_v52  ;;  %vm1182_vm14 = vweird.f32 %v1175_v52 }
 0x368   : > { %3095 = vrcp.f32 %v1176_v35 }
 0x369   : > { %v1189_v38 = vor.u32 1.1754944e-38, %v1188_v49  ;;  %vm1187_vm0 = vcmp.eq.f32.partialorder %v1186_v59, 8.507059e+37 }
 0x36d   : > { %v3094_v58 = vpop.eup %3093 }
 0x36e   : > { %v3096_v8 = vpop.eup %3095  ;;  %v1178_v62 = vmul.f32 %v3094_v58, %v1175_v52  ;;  %vm1183_vm13 = vweird.f32 %v3094_v58 }
 0x36f   : > { %v1193_v13 = vmul.f32 %v3096_v8, %v1176_v35  ;;  %vm1184_vm15 = vmor %vm1182_vm14, %vm1183_vm13  ;;  %vm1198_vm1 = vweird.f32 %v3096_v8 }
 0x370   : > { %v1179_v44 = vsub.f32 1.0, %v1178_v62  ;;  %vm1199_vm3 = vmor %vm1197_vm2, %vm1198_vm1 }
 0x371   : > { %v1194_v48 = vsub.f32 1.0, %v1193_v13 }
 0x372   : > { %v1180_v18 = vmul.f32 %v3094_v58, %v1179_v44 }
 0x373   : > { %v1195_v21 = vmul.f32 %v3096_v8, %v1194_v48 }
 0x374   : > { %v1181_v60 = vadd.f32 %v3094_v58, %v1180_v18 }
 0x375   : > { %v1196_v46 = vadd.f32 %v3096_v8, %v1195_v21 }
 0x376   : > { %v1185_v0 = vsel %vm1184_vm15, %v3094_v58, %v1181_v60 }
 0x377   : > { %v1190_v41 = vsel %vm1187_vm0, %v1189_v38, %v1185_v0  ;;  %v1200_v56 = vsel %vm1199_vm3, %v3096_v8, %v1196_v46 }
 0x378   : > { %v1208_v10 = vmul.f32 %v1207_v57, %v1190_v41  ;;  %v1205_v52 = vsel %vm1202_vm4, %v1204_v27, %v1200_v56 }
 0x37a   : > { %v1209_v26 = vadd.f32 %v1208_v10, %v3720_v1 }
 0x37c   : > { %3097 = vtanh.f32 %v1209_v26 }
 0x382   : > { %v3098_v5 = vpop.eup %3097 }
 0x383   : > { %v1211_v53 = vsub.f32 %v3798_v2, %v3098_v5 }
 0x385   : > { %v1212_v58 = vmul.f32 %v1211_v53, %v1205_v52 }
 0x387   : > { %v3831_v62 = vadd.f32 %v3098_v5, %v1212_v58 }
 0x389   : > { %v1221_v1 = vpack.c.bf16 %v3831_v62, %v3831_v62 }
 0x38b   : > { %1230 = vmatmul.bf16.vlgmr.msrb.gmra.mxu2 %v1221_v1  ;;  %1243 = vmatmul.bf16.vlgmr.msrb.gmra.mxu3 %v1221_v1 }
 0x38c   : > { %1256 = vmatmul.bf16.vlgmr.msrb.gmra.mxu0 %v1221_v1  ;;  %1436 = vmatpush.bf16.msrb.mxu2 %v3463_v29 }
 0x38d   : > { %1504 = vmatpush.bf16.msrb.mxu3 %v3412_v11  ;;  %1517 = vmatpush.bf16.msrb.mxu0 %v3425_v15 }
 0x390   : > { %1437 = vmatpush.bf16.msrb.mxu2 %v3491_v40 }
 0x391   : > { %1505 = vmatpush.bf16.msrb.mxu3 %v3430_v17  ;;  %1518 = vmatpush.bf16.msrb.mxu0 %v3441_v20 }
 0x394   : > { %1438 = vmatpush.bf16.msrb.mxu2 %v3522_v50 }
 0x395   : > { %1506 = vmatpush.bf16.msrb.mxu3 %v3450_v23  ;;  %1519 = vmatpush.bf16.msrb.mxu0 %v3474_v33 }
 0x398   : > { %1439 = vmatpush.bf16.msrb.mxu2 %v3550_v61 }
 0x399   : > { %1507 = vmatpush.bf16.msrb.mxu3 %v3476_v34  ;;  %1520 = vmatpush.bf16.msrb.mxu0 %v3498_v42 }
 0x39c   : > { %1440 = vmatpush.bf16.msrb.mxu2 %v3582_v7 }
 0x39d   : > { %1508 = vmatpush.bf16.msrb.mxu3 %v3509_v45  ;;  %1521 = vmatpush.bf16.msrb.mxu0 %v3533_v54 }
 0x3a0   : > { %1441 = vmatpush.bf16.msrb.mxu2 %v3612_v24 }
 0x3a1   : > { %1509 = vmatpush.bf16.msrb.mxu3 %v3535_v55  ;;  %1522 = vmatpush.bf16.msrb.mxu0 %v3557_v63 }
 0x3a4   : > { %1442 = vmatpush.bf16.msrb.mxu2 %v3636_v32 }
 0x3a5   : > { %1510 = vmatpush.bf16.msrb.mxu3 %v3571_v3  ;;  %1523 = vmatpush.bf16.msrb.mxu0 %v3584_v9 }
 0x3a8   : > { %1443 = vmatpush.bf16.msrb.mxu2 %v3644_v36 }
 0x3a9   : > { %1511 = vmatpush.bf16.msrb.mxu3 %v3596_v14  ;;  %1524 = vmatpush.bf16.msrb.mxu0 %v3610_v22 }
 0x409   : > { %v1257_v35 = vpop.f32.mrf.mxu0 }
 0x40a   : > { %v1301_v52 = vadd.f32 %v3760_v43, %v1257_v35 }
 0x40e   : > { %v1231_v8 = vpop.f32.mrf.mxu2  ;;  %v1244_v44 = vpop.f32.mrf.mxu3 }
 0x40f   : > { %v1261_v13 = vadd.f32 %v1231_v8, %v3722_v4  ;;  %v1262_v49 = vadd.f32 %v1244_v44, %v3724_v6 }
 0x411   : > { %v2637_v18 = vmul.f32 -1.442695, %v1261_v13  ;;  %v2638_v59 = vmul.f32 -1.442695, %v1262_v49  ;;  %v1259_v60 = vpop.f32.mrf.mxu0 }
 0x413   : > { %3099 = vpow2.f32 %v2637_v18 }
 0x414   : > { %3101 = vpow2.f32 %v2638_v59 }
 0x416   : > { %v1233_v48 = vpop.f32.mrf.mxu2  ;;  %v1246_v38 = vpop.f32.mrf.mxu3 }
 0x419   : > { %v3100_v57 = vpop.eup %3099 }
 0x41a   : > { %v3102_v0 = vpop.eup %3101  ;;  %v1269_v41 = vadd.f32 1.0, %v3100_v57 }
 0x41b   : > { %v1270_v10 = vadd.f32 1.0, %v3102_v0 }
 0x41c   : > { %3103 = vrcp.f32 %v1269_v41  ;;  %v1282_v4 = vand.u32 2147483648, %v1269_v41  ;;  %v1280_v56 = vand.u32 2147483647, %v1269_v41  ;;  %vm1276_vm6 = vweird.f32 %v1269_v41 }
 0x41d   : > { %3105 = vrcp.f32 %v1270_v10  ;;  %v1297_v18 = vand.u32 2147483648, %v1270_v10  ;;  %vm1291_vm10 = vweird.f32 %v1270_v10  ;;  %v1295_v59 = vand.u32 2147483647, %v1270_v10 }
 0x41e   : > { %v1283_v27 = vor.u32 1.1754944e-38, %v1282_v4  ;;  %vm1281_vm8 = vcmp.eq.f32.partialorder %v1280_v56, 8.507059e+37 }
 0x41f   : > { %v1298_v38 = vor.u32 1.1754944e-38, %v1297_v18  ;;  %vm1296_vm12 = vcmp.eq.f32.partialorder %v1295_v59, 8.507059e+37 }
 0x422   : > { %v3104_v21 = vpop.eup %3103 }
 0x423   : > { %v3106_v26 = vpop.eup %3105  ;;  %v1272_v46 = vmul.f32 %v3104_v21, %v1269_v41  ;;  %vm1277_vm5 = vweird.f32 %v3104_v21 }
 0x424   : > { %v1287_v39 = vmul.f32 %v3106_v26, %v1270_v10  ;;  %vm1278_vm7 = vmor %vm1276_vm6, %vm1277_vm5  ;;  %vm1292_vm9 = vweird.f32 %v3106_v26 }
 0x425   : > { %v1273_v51 = vsub.f32 1.0, %v1272_v46  ;;  %vm1293_vm11 = vmor %vm1291_vm10, %vm1292_vm9 }
 0x426   : > { %v1288_v53 = vsub.f32 1.0, %v1287_v39 }
 0x427   : > { %v1274_v6 = vmul.f32 %v3104_v21, %v1273_v51 }
 0x428   : > { %v1289_v44 = vmul.f32 %v3106_v26, %v1288_v53 }
 0x429   : > { %v1275_v5 = vadd.f32 %v3104_v21, %v1274_v6 }
 0x42a   : > { %v1290_v49 = vadd.f32 %v3106_v26, %v1289_v44 }
 0x42b   : > { %v1279_v58 = vsel %vm1278_vm7, %v3104_v21, %v1275_v5 }
 0x42c   : > { %v1284_v1 = vsel %vm1281_vm8, %v1283_v27, %v1279_v58  ;;  %v1294_v60 = vsel %vm1293_vm11, %v3106_v26, %v1290_v49 }
 0x42d   : > { %v1302_v8 = vmul.f32 %v1301_v52, %v1284_v1  ;;  %v1299_v57 = vsel %vm1296_vm12, %v1298_v38, %v1294_v60  ;;  %v2956_v38 = vld [vmem:[#allocation6 + $0x38] sm:$0xff] }
 0x42f   : > { %v1303_v13 = vadd.f32 %v1302_v8, %v3727_v12 }
 0x431   : > { %3107 = vtanh.f32 %v1303_v13 }
 0x437   : > { %v3108_v48 = vpop.eup %3107 }
 0x438   : > { %v1305_v35 = vsub.f32 %v3831_v62, %v3108_v48 }
 0x43a   : > { %v1306_v0 = vmul.f32 %v1305_v35, %v1299_v57  ;;  %v2955_v35 = vld [vmem:[#allocation6 + $0x30] sm:$0xff]  ;;  %v2954_v57 = vld [vmem:[#allocation6 + $0x28] sm:$0xff] }
 0x43c   : > { %v3864_v41 = vadd.f32 %v3108_v48, %v1306_v0  ;;  %v2953_v0 = vld [vmem:[#allocation6 + $0x20] sm:$0xff] }
 0x43e   : > { %v1315_v12 = vpack.c.bf16 %v3864_v41, %v3864_v41 }
 0x440   : > { %1324 = vmatmul.bf16.vlgmr.msra.gmra.mxu1 %v1315_v12  ;;  %1337 = vmatmul.bf16.vlgmr.msra.gmra.mxu2 %v1315_v12 }
 0x441   : > { %1350 = vmatmul.bf16.vlgmr.msra.gmra.mxu3 %v1315_v12  ;;  %1530 = vmatpush.bf16.msra.mxu1 %v3463_v29 }
 0x442   : > { %1598 = vmatpush.bf16.msra.mxu2 %v3412_v11  ;;  %1611 = vmatpush.bf16.msra.mxu3 %v3425_v15 }
 0x445   : > { %1531 = vmatpush.bf16.msra.mxu1 %v3491_v40 }
 0x446   : > { %1599 = vmatpush.bf16.msra.mxu2 %v3430_v17  ;;  %1612 = vmatpush.bf16.msra.mxu3 %v3441_v20 }
 0x449   : > { %1532 = vmatpush.bf16.msra.mxu1 %v3522_v50 }
 0x44a   : > { %1600 = vmatpush.bf16.msra.mxu2 %v3450_v23  ;;  %1613 = vmatpush.bf16.msra.mxu3 %v3474_v33 }
 0x44d   : > { %1533 = vmatpush.bf16.msra.mxu1 %v3550_v61 }
 0x44e   : > { %1601 = vmatpush.bf16.msra.mxu2 %v3476_v34  ;;  %1614 = vmatpush.bf16.msra.mxu3 %v3498_v42 }
 0x451   : > { %1534 = vmatpush.bf16.msra.mxu1 %v3582_v7 }
 0x452   : > { %1602 = vmatpush.bf16.msra.mxu2 %v3509_v45  ;;  %1615 = vmatpush.bf16.msra.mxu3 %v3533_v54 }
 0x455   : > { %1535 = vmatpush.bf16.msra.mxu1 %v3612_v24 }
 0x456   : > { %1603 = vmatpush.bf16.msra.mxu2 %v3535_v55  ;;  %1616 = vmatpush.bf16.msra.mxu3 %v3557_v63 }
 0x459   : > { %1536 = vmatpush.bf16.msra.mxu1 %v3636_v32 }
 0x45a   : > { %1604 = vmatpush.bf16.msra.mxu2 %v3571_v3  ;;  %1617 = vmatpush.bf16.msra.mxu3 %v3584_v9 }
 0x45d   : > { %1537 = vmatpush.bf16.msra.mxu1 %v3644_v36 }
 0x45e   : > { %1605 = vmatpush.bf16.msra.mxu2 %v3596_v14  ;;  %1618 = vmatpush.bf16.msra.mxu3 %v3610_v22 }
 0x4bd   : > { %v1325_v11 = vpop.f32.mrf.mxu1 }
 0x4be   : > { %v1355_v15 = vadd.f32 %v1325_v11, %v3729_v16 }
 0x4c0   : > { %v2639_v17 = vmul.f32 -1.442695, %v1355_v15  ;;  %v2951_v15 = vld [vmem:[#allocation6 + $0x10] sm:$0xff] }
 0x4c2   : > { %3109 = vpow2.f32 %v2639_v17 }
 0x4c3   : > { %v1338_v20 = vpop.f32.mrf.mxu2 }
 0x4c4   : > { %v1356_v23 = vadd.f32 %v1338_v20, %v3731_v19  ;;  %v1351_v33 = vpop.f32.mrf.mxu3 }
 0x4c5   : > { %v1327_v34 = vpop.f32.mrf.mxu1  ;;  %v1395_v56 = vadd.f32 %v3760_v43, %v1351_v33 }
 0x4c6   : > { %v2640_v42 = vmul.f32 -1.442695, %v1356_v23  ;;  %v2949_v34 = vld [vmem:[#allocation6] sm:$0xff] }
 0x4c8   : > { %v3110_v45 = vpop.eup %3109  ;;  %3111 = vpow2.f32 %v2640_v42 }
 0x4c9   : > { %v1363_v54 = vadd.f32 1.0, %v3110_v45 }
 0x4cb   : > { %3113 = vrcp.f32 %v1363_v54  ;;  %v1340_v55 = vpop.f32.mrf.mxu2  ;;  %v1376_v10 = vand.u32 2147483648, %v1363_v54  ;;  %v1374_v26 = vand.u32 2147483647, %v1363_v54  ;;  %vm1370_vm14 = vweird.f32 %v1363_v54 }
 0x4cc   : > { %v1353_v63 = vpop.f32.mrf.mxu3 }
 0x4cd   : > { %v1377_v4 = vor.u32 1.1754944e-38, %v1376_v10  ;;  %vm1375_vm0 = vcmp.eq.f32.partialorder %v1374_v26, 8.507059e+37 }
 0x4ce   : > { %v3112_v3 = vpop.eup %3111 }
 0x4cf   : > { %v1364_v9 = vadd.f32 1.0, %v3112_v3 }
 0x4d1   : > { %v3114_v14 = vpop.eup %3113  ;;  %3115 = vrcp.f32 %v1364_v9  ;;  %v1391_v1 = vand.u32 2147483648, %v1364_v9  ;;  %vm1385_vm2 = vweird.f32 %v1364_v9  ;;  %v1389_v8 = vand.u32 2147483647, %v1364_v9 }
 0x4d2   : > { %v1366_v22 = vmul.f32 %v3114_v14, %v1363_v54  ;;  %vm1371_vm13 = vweird.f32 %v3114_v14 }
 0x4d3   : > { %vm1372_vm15 = vmor %vm1370_vm14, %vm1371_vm13  ;;  %v1392_v49 = vor.u32 1.1754944e-38, %v1391_v1  ;;  %vm1390_vm4 = vcmp.eq.f32.partialorder %v1389_v8, 8.507059e+37  ;;  %v2988_v8 = vld [vmem:[#allocation6 + $0x138] sm:$0xff]  ;;  %vm1026_vm13 = vcmp.ge.f32.partialorder %v3765_v30, 0.0 }
 0x4d4   : > { %v1367_v16 = vsub.f32 1.0, %v1366_v22 }
 0x4d6   : > { %v1368_v21 = vmul.f32 %v3114_v14, %v1367_v16 }
 0x4d7   : > { %v3116_v19 = vpop.eup %3115 }
 0x4d8   : > { %v1381_v46 = vmul.f32 %v3116_v19, %v1364_v9  ;;  %v1369_v51 = vadd.f32 %v3114_v14, %v1368_v21  ;;  %vm1386_vm1 = vweird.f32 %v3116_v19 }
 0x4d9   : > { %vm1387_vm3 = vmor %vm1385_vm2, %vm1386_vm1 }
 0x4da   : > { %v1382_v39 = vsub.f32 1.0, %v1381_v46  ;;  %v1373_v6 = vsel %vm1372_vm15, %v3114_v14, %v1369_v51 }
 0x4db   : > { %v1378_v5 = vsel %vm1375_vm0, %v1377_v4, %v1373_v6 }
 0x4dc   : > { %v1396_v27 = vmul.f32 %v1395_v56, %v1378_v5  ;;  %v1383_v53 = vmul.f32 %v3116_v19, %v1382_v39 }
 0x4de   : > { %v1397_v52 = vadd.f32 %v1396_v27, %v3734_v25  ;;  %v1384_v58 = vadd.f32 %v3116_v19, %v1383_v53 }
 0x4e0   : > { %3117 = vtanh.f32 %v1397_v52  ;;  %v1388_v44 = vsel %vm1387_vm3, %v3116_v19, %v1384_v58 }
 0x4e1   : > { %v1393_v59 = vsel %vm1390_vm4, %v1392_v49, %v1388_v44  ;;  %v2987_v44 = vld [vmem:[#allocation6 + $0x130] sm:$0xff]  ;;  %v1027_v49 = vmul.f32 0.22916667, %v3765_v30 }
 0x4e6   : > { %v3118_v13 = vpop.eup %3117 }
 0x4e7   : > { %v1399_v18 = vsub.f32 %v3864_v41, %v3118_v13 }
 0x4e9   : > { %v1400_v60 = vmul.f32 %v1399_v18, %v1393_v59  ;;  %v2985_v18 = vld [vmem:[#allocation6 + $0x120] sm:$0xff]  ;;  %v1028_v59 = vsel %vm1026_vm13, %v3765_v30, %v1027_v49  ;;  %v2964_v30 = vld [vmem:[#allocation6 + $0x78] sm:$0xff] }
 0x4eb   : > { %v3897_v48 = vadd.f32 %v3118_v13, %v1400_v60  ;;  %v2986_v13 = vld [vmem:[#allocation6 + $0x128] sm:$0xff]  ;;  %v2984_v60 = vld [vmem:[#allocation6 + $0x118] sm:$0xff] }
 0x4ed   : > { %v1409_v25 = vpack.c.bf16 %v3897_v48, %v3897_v48  ;;  %vm1402_vm14 = vcmp.ge.f32.partialorder %v3897_v48, 0.0 }
 0x4ef   : > { %1418 = vmatmul.bf16.vlgmr.msra.gmra.mxu0 %v1409_v25  ;;  %1431 = vmatmul.bf16.vlgmr.msrb.gmra.mxu1 %v1409_v25 }
 0x4f0   : > { %1444 = vmatmul.bf16.vlgmr.msrb.gmra.mxu2 %v1409_v25  ;;  %1624 = vmatpush.bf16.msra.mxu0 %v3463_v29  ;;  %v1029_v25 = vpack.c.bf16 %v1028_v59, %v1028_v59 }
 0x4f1   : > { %2204 = vmatpush.bf16.msrb.mxu1 %v2956_v38  ;;  %v2983_v38 = vld [vmem:[#allocation6 + $0x110] sm:$0xff]  ;;  %2217 = vmatpush.bf16.msrb.mxu2 %v2964_v30 }
 0x4f4   : > { %1625 = vmatpush.bf16.msra.mxu0 %v3491_v40 }
 0x4f5   : > { %2205 = vmatpush.bf16.msrb.mxu1 %v2955_v35  ;;  %v2982_v35 = vld [vmem:[#allocation6 + $0x108] sm:$0xff] }
 0x4f8   : > { %1626 = vmatpush.bf16.msra.mxu0 %v3522_v50 }
 0x4f9   : > { %2206 = vmatpush.bf16.msrb.mxu1 %v2954_v57  ;;  %v1403_v57 = vmul.f32 0.22916667, %v3897_v48 }
 0x4fc   : > { %1627 = vmatpush.bf16.msra.mxu0 %v3550_v61 }
 0x4fd   : > { %2207 = vmatpush.bf16.msrb.mxu1 %v2953_v0  ;;  %v2963_v0 = vld [vmem:[#allocation6 + $0x70] sm:$0xff] }
 0x4fe   : > { %2218 = vmatpush.bf16.msrb.mxu2 %v2963_v0 }
 0x500   : > { %1628 = vmatpush.bf16.msra.mxu0 %v3582_v7 }
 0x504   : > { %1629 = vmatpush.bf16.msra.mxu0 %v3612_v24  ;;  %v2952_v24 = vld [vmem:[#allocation6 + $0x18] sm:$0xff] }
 0x505   : > { %2208 = vmatpush.bf16.msrb.mxu1 %v2952_v24 }
 0x508   : > { %1630 = vmatpush.bf16.msra.mxu0 %v3636_v32 }
 0x509   : > { %2209 = vmatpush.bf16.msrb.mxu1 %v2951_v15 }
 0x50c   : > { %1631 = vmatpush.bf16.msra.mxu0 %v3644_v36 }
 0x56c   : > { %v1419_v29 = vpop.f32.mrf.mxu0  ;;  %v1432_v40 = vpop.f32.mrf.mxu1 }
 0x56d   : > { %v1449_v50 = vadd.f32 %v1419_v29, %v3736_v28  ;;  %v1450_v61 = vadd.f32 %v1432_v40, %v3738_v31  ;;  %v2950_v28 = vld [vmem:[#allocation6 + $0x8] sm:$0xff]  ;;  %v2981_v29 = vld [vmem:[#allocation6 + $0x100] sm:$0xff]  ;;  %v1404_v40 = vsel %vm1402_vm14, %v3897_v48, %v1403_v57 }
 0x56e   : > { %2210 = vmatpush.bf16.msrb.mxu1 %v2950_v28 }
 0x56f   : > { %v2641_v7 = vmul.f32 -1.442695, %v1449_v50  ;;  %v2642_v12 = vmul.f32 -1.442695, %v1450_v61  ;;  %v1405_v50 = vpack.c.bf16 %v1404_v40, %v1404_v40  ;;  %v2972_v61 = vld [vmem:[#allocation6 + $0xb8] sm:$0xff] }
 0x571   : > { %3119 = vpow2.f32 %v2641_v7  ;;  %v2971_v7 = vld [vmem:[#allocation6 + $0xb0] sm:$0xff] }
 0x572   : > { %3121 = vpow2.f32 %v2642_v12  ;;  %2211 = vmatpush.bf16.msrb.mxu1 %v2949_v34 }
 0x573   : > { %v1445_v32 = vpop.f32.mrf.mxu2 }
 0x574   : > { %v1421_v36 = vpop.f32.mrf.mxu0  ;;  %v1434_v11 = vpop.f32.mrf.mxu1  ;;  %v1489_v26 = vadd.f32 %v3760_v43, %v1445_v32 }
 0x575   : > { %v2962_v36 = vld [vmem:[#allocation6 + $0x68] sm:$0xff] }
 0x576   : > { %v2970_v11 = vld [vmem:[#allocation6 + $0xa8] sm:$0xff]  ;;  %2219 = vmatpush.bf16.msrb.mxu2 %v2962_v36 }
 0x577   : > { %v3120_v17 = vpop.eup %3119 }
 0x578   : > { %v3122_v20 = vpop.eup %3121  ;;  %v1457_v23 = vadd.f32 1.0, %v3120_v17  ;;  %v4004_v17 = vld [vmem:[#allocation11_spill] sm:$0xff] }
 0x579   : > { %v1458_v33 = vadd.f32 1.0, %v3122_v20 }
 0x57a   : > { %3123 = vrcp.f32 %v1457_v23  ;;  %v1470_v3 = vand.u32 2147483648, %v1457_v23  ;;  %v1468_v14 = vand.u32 2147483647, %v1457_v23  ;;  %vm1464_vm6 = vweird.f32 %v1457_v23 }
 0x57b   : > { %3125 = vrcp.f32 %v1458_v33  ;;  %v1447_v31 = vpop.f32.mrf.mxu2  ;;  %v1485_v6 = vand.u32 2147483648, %v1458_v33  ;;  %vm1479_vm10 = vweird.f32 %v1458_v33  ;;  %v1483_v56 = vand.u32 2147483647, %v1458_v33 }
 0x57c   : > { %v1471_v10 = vor.u32 1.1754944e-38, %v1470_v3  ;;  %vm1469_vm8 = vcmp.eq.f32.partialorder %v1468_v14, 8.507059e+37  ;;  %v2980_v31 = vld [vmem:[#allocation6 + $0xf8] sm:$0xff]  ;;  %v2978_v14 = vld [vmem:[#allocation6 + $0xe8] sm:$0xff] }
 0x57d   : > { %v1486_v53 = vor.u32 1.1754944e-38, %v1485_v6  ;;  %vm1484_vm12 = vcmp.eq.f32.partialorder %v1483_v56, 8.507059e+37 }
 0x580   : > { %v3124_v42 = vpop.eup %3123 }
 0x581   : > { %v3126_v45 = vpop.eup %3125  ;;  %v1460_v54 = vmul.f32 %v3124_v42, %v1457_v23  ;;  %vm1465_vm5 = vweird.f32 %v3124_v42  ;;  %v2961_v23 = vld [vmem:[#allocation6 + $0x60] sm:$0xff] }
 0x582   : > { %v1475_v63 = vmul.f32 %v3126_v45, %v1458_v33  ;;  %vm1466_vm7 = vmor %vm1464_vm6, %vm1465_vm5  ;;  %vm1480_vm9 = vweird.f32 %v3126_v45  ;;  %v2969_v33 = vld [vmem:[#allocation6 + $0xa0] sm:$0xff]  ;;  %2220 = vmatpush.bf16.msrb.mxu2 %v2961_v23 }
 0x583   : > { %v1461_v55 = vsub.f32 1.0, %v1460_v54  ;;  %vm1481_vm11 = vmor %vm1479_vm10, %vm1480_vm9  ;;  %v2979_v54 = vld [vmem:[#allocation6 + $0xf0] sm:$0xff]  ;;  %vm1308_vm9 = vcmp.ge.f32.partialorder %v3864_v41, 0.0 }
 0x584   : > { %v1476_v16 = vsub.f32 1.0, %v1475_v63  ;;  %v2967_v63 = vld [vmem:[#allocation6 + $0x90] sm:$0xff] }
 0x585   : > { %v1462_v9 = vmul.f32 %v3124_v42, %v1461_v55  ;;  %v2959_v55 = vld [vmem:[#allocation6 + $0x50] sm:$0xff] }
 0x586   : > { %v1477_v51 = vmul.f32 %v3126_v45, %v1476_v16 }
 0x587   : > { %v1463_v22 = vadd.f32 %v3124_v42, %v1462_v9 }
 0x588   : > { %v1478_v39 = vadd.f32 %v3126_v45, %v1477_v51  ;;  %v2957_v51 = vld [vmem:[#allocation6 + $0x40] sm:$0xff] }
 0x589   : > { %v1467_v21 = vsel %vm1466_vm7, %v3124_v42, %v1463_v22  ;;  %vm1120_vm7 = vcmp.ge.f32.partialorder %v3798_v2, 0.0 }
 0x58a   : > { %v1472_v19 = vsel %vm1469_vm8, %v1471_v10, %v1467_v21  ;;  %v1482_v5 = vsel %vm1481_vm11, %v3126_v45, %v1478_v39  ;;  %v2968_v45 = vld [vmem:[#allocation6 + $0x98] sm:$0xff]  ;;  %v2958_v21 = vld [vmem:[#allocation6 + $0x48] sm:$0xff]  ;;  %vm1214_vm8 = vcmp.ge.f32.partialorder %v3831_v62, 0.0 }
 0x58b   : > { %v1490_v46 = vmul.f32 %v1489_v26, %v1472_v19  ;;  %v1487_v58 = vsel %vm1484_vm12, %v1486_v53, %v1482_v5  ;;  %v2966_v26 = vld [vmem:[#allocation6 + $0x88] sm:$0xff]  ;;  %v2976_v39 = vld [vmem:[#allocation6 + $0xd8] sm:$0xff]  ;;  %v2975_v5 = vld [vmem:[#allocation6 + $0xd0] sm:$0xff] }
 0x58d   : > { %v1491_v4 = vadd.f32 %v1490_v46, %v3741_v37  ;;  %v2977_v46 = vld [vmem:[#allocation6 + $0xe0] sm:$0xff] }
 0x58f   : > { %3127 = vtanh.f32 %v1491_v4  ;;  %v2965_v4 = vld [vmem:[#allocation6 + $0x80] sm:$0xff] }
 0x595   : > { %v3128_v27 = vpop.eup %3127 }
 0x596   : > { %v1493_v52 = vsub.f32 %v3897_v48, %v3128_v27 }
 0x598   : > { %v1494_v43 = vmul.f32 %v1493_v52, %v1487_v58 }
 0x59a   : > { %v3914_v1 = vadd.f32 %v3128_v27, %v1494_v43 }
 0x59c   : > { %v1503_v37 = vpack.c.bf16 %v3914_v1, %v3914_v1  ;;  %vm1496_vm10 = vcmp.ge.f32.partialorder %v3914_v1, 0.0 }
 0x59e   : > { %1512 = vmatmul.bf16.vlgmr.msrb.gmra.mxu3 %v1503_v37  ;;  %1525 = vmatmul.bf16.vlgmr.msrb.gmra.mxu0 %v1503_v37 }
 0x59f   : > { %1538 = vmatmul.bf16.vlgmr.msra.gmra.mxu1 %v1503_v37  ;;  %2230 = vmatpush.bf16.msrb.mxu3 %v2972_v61  ;;  %v2974_v37 = vld [vmem:[#allocation6 + $0xc8] sm:$0xff] }
 0x5a0   : > { %2256 = vmatpush.bf16.msra.mxu1 %v2988_v8  ;;  %2243 = vmatpush.bf16.msrb.mxu0 %v2980_v31  ;;  %v3003_v31 = vld [vmem:[#allocation6 + $0x1b0] sm:$0xff] }
 0x5a3   : > { %2231 = vmatpush.bf16.msrb.mxu3 %v2971_v7 }
 0x5a4   : > { %2257 = vmatpush.bf16.msra.mxu1 %v2987_v44  ;;  %2244 = vmatpush.bf16.msrb.mxu0 %v2979_v54  ;;  %v1309_v54 = vmul.f32 0.22916667, %v3864_v41 }
 0x5a7   : > { %2232 = vmatpush.bf16.msrb.mxu3 %v2970_v11 }
 0x5a8   : > { %2258 = vmatpush.bf16.msra.mxu1 %v2986_v13  ;;  %2245 = vmatpush.bf16.msrb.mxu0 %v2978_v14  ;;  %v1310_v14 = vsel %vm1308_vm9, %v3864_v41, %v1309_v54  ;;  %v1497_v41 = vmul.f32 0.22916667, %v3914_v1 }
 0x5ab   : > { %2233 = vmatpush.bf16.msrb.mxu3 %v2969_v33  ;;  %v3004_v33 = vld [vmem:[#allocation6 + $0x1b8] sm:$0xff] }
 0x5ac   : > { %2259 = vmatpush.bf16.msra.mxu1 %v2985_v18  ;;  %2246 = vmatpush.bf16.msrb.mxu0 %v2977_v46  ;;  %v2991_v46 = vld [vmem:[#allocation6 + $0x150] sm:$0xff] }
 0x5af   : > { %2212 = vmatmul.bf16.vlgmr.msrb.gmra.mxu1 %v1029_v25  ;;  %2234 = vmatpush.bf16.msrb.mxu3 %v2968_v45  ;;  %v3935_v25 = vld [vmem:[%s3991_s5] ss:$0 sm:$0xff]  ;;  %v1215_v45 = vmul.f32 0.22916667, %v3831_v62 }
 0x5b0   : > { %2260 = vmatpush.bf16.msra.mxu1 %v2984_v60  ;;  %2247 = vmatpush.bf16.msrb.mxu0 %v2976_v39  ;;  %v2973_v60 = vld [vmem:[#allocation6 + $0xc0] sm:$0xff] }
 0x5b1   : > { %v2989_v39 = vld [vmem:[#allocation6 + $0x140] sm:$0xff] }
 0x5b3   : > { %2235 = vmatpush.bf16.msrb.mxu3 %v2967_v63  ;;  %v3001_v63 = vld [vmem:[#allocation6 + $0x1a0] sm:$0xff] }
 0x5b4   : > { %2261 = vmatpush.bf16.msra.mxu1 %v2983_v38  ;;  %2248 = vmatpush.bf16.msrb.mxu0 %v2975_v5 }
 0x5b7   : > { %2236 = vmatpush.bf16.msrb.mxu3 %v2966_v26  ;;  %v3000_v26 = vld [vmem:[#allocation6 + $0x198] sm:$0xff] }
 0x5b8   : > { %2262 = vmatpush.bf16.msra.mxu1 %v2982_v35  ;;  %2249 = vmatpush.bf16.msrb.mxu0 %v2974_v37  ;;  %v3010_v37 = vld [vmem:[#allocation6 + $0x1e8] sm:$0xff] }
 0x5bb   : > { %2237 = vmatpush.bf16.msrb.mxu3 %v2965_v4 }
 0x5bc   : > { %2263 = vmatpush.bf16.msra.mxu1 %v2981_v29  ;;  %2250 = vmatpush.bf16.msrb.mxu0 %v2973_v60  ;;  %v3009_v60 = vld [vmem:[#allocation6 + $0x1e0] sm:$0xff] }
 0x5bf   : > { %2264 = vmatmul.bf16.vlgmr.msra.gmra.mxu1 %v1405_v50  ;;  %v4005_v50 = vld [vmem:[#allocation12_spill] sm:$0xff] }
 0x61b   : > { %v1526_v12 = vpop.f32.mrf.mxu0 }
 0x61c   : > { %v1544_v24 = vadd.f32 %v1526_v12, %v3745_v47  ;;  %v3925_v32 = vpop.f32.mrf.mxu1  ;;  %v2960_v47 = vld [vmem:[#allocation6 + $0x58] sm:$0xff] }
 0x61d   : > { %2221 = vmatpush.bf16.msrb.mxu2 %v2960_v47  ;;  %v1583_v38 = vadd.f32 %v3935_v25, %v3925_v32  ;;  %v1121_v47 = vmul.f32 0.22916667, %v3798_v2 }
 0x61e   : > { %v2644_v15 = vmul.f32 -1.442695, %v1544_v24 }
 0x620   : > { %3129 = vpow2.f32 %v2644_v15 }
 0x621   : > { %v1513_v48 = vpop.f32.mrf.mxu3  ;;  %2222 = vmatpush.bf16.msrb.mxu2 %v2959_v55  ;;  %v2993_v55 = vld [vmem:[#allocation6 + $0x160] sm:$0xff] }
 0x622   : > { %v1543_v20 = vadd.f32 %v1513_v48, %v4004_v17 }
 0x623   : > { %v1528_v28 = vpop.f32.mrf.mxu0 }
 0x624   : > { %v2643_v34 = vmul.f32 -1.442695, %v1543_v20  ;;  %v1541_v42 = vpop.f32.mrf.mxu1  ;;  %v2996_v20 = vld [vmem:[#allocation6 + $0x178] sm:$0xff]  ;;  %v2995_v28 = vld [vmem:[#allocation6 + $0x170] sm:$0xff] }
 0x625   : > { %2223 = vmatpush.bf16.msrb.mxu2 %v2958_v21  ;;  %v3002_v42 = vld [vmem:[#allocation6 + $0x1a8] sm:$0xff] }
 0x626   : > { %3131 = vpow2.f32 %v2643_v34  ;;  %v3130_v3 = vpop.eup %3129  ;;  %v2994_v34 = vld [vmem:[#allocation6 + $0x168] sm:$0xff] }
 0x627   : > { %v1552_v16 = vadd.f32 1.0, %v3130_v3  ;;  %v1122_v3 = vsel %vm1120_vm7, %v3798_v2, %v1121_v47  ;;  %v2990_v2 = vld [vmem:[#allocation6 + $0x148] sm:$0xff] }
 0x629   : > { %v1515_v9 = vpop.f32.mrf.mxu3  ;;  %2224 = vmatpush.bf16.msrb.mxu2 %v2957_v51  ;;  %v1579_v7 = vand.u32 2147483648, %v1552_v16  ;;  %vm1573_vm4 = vweird.f32 %v1552_v16  ;;  %v1577_v12 = vand.u32 2147483647, %v1552_v16  ;;  %v2999_v51 = vld [vmem:[#allocation6 + $0x190] sm:$0xff] }
 0x62a   : > { %v1216_v9 = vsel %vm1214_vm8, %v3831_v62, %v1215_v45  ;;  %v2998_v62 = vld [vmem:[#allocation6 + $0x188] sm:$0xff] }
 0x62b   : > { %v1580_v11 = vor.u32 1.1754944e-38, %v1579_v7  ;;  %vm1578_vm6 = vcmp.eq.f32.partialorder %v1577_v12, 8.507059e+37  ;;  %v1217_v21 = vpack.c.bf16 %v1216_v9, %v1216_v9  ;;  %v3006_v12 = vld [vmem:[#allocation6 + $0x1c8] sm:$0xff] }
 0x62c   : > { %v3132_v22 = vpop.eup %3131  ;;  %v3928_v10 = vpop.f32.mrf.mxu1 }
 0x62d   : > { %v1551_v19 = vadd.f32 1.0, %v3132_v22  ;;  %v2992_v22 = vld [vmem:[#allocation6 + $0x158] sm:$0xff] }
 0x62f   : > { %3133 = vrcp.f32 %v1551_v19  ;;  %v1564_v43 = vand.u32 2147483648, %v1551_v19  ;;  %v1562_v44 = vand.u32 2147483647, %v1551_v19  ;;  %vm1558_vm0 = vweird.f32 %v1551_v19 }
 0x630   : > { %3135 = vrcp.f32 %v1552_v16 }
 0x631   : > { %v1565_v59 = vor.u32 1.1754944e-38, %v1564_v43  ;;  %vm1563_vm2 = vcmp.eq.f32.partialorder %v1562_v44, 8.507059e+37 }
 0x634   : > { %v2215_v6 = vpop.f32.mrf.mxu1 }
 0x635   : > { %v3134_v56 = vpop.eup %3133  ;;  %v2997_v6 = vld [vmem:[#allocation6 + $0x180] sm:$0xff] }
 0x636   : > { %v3136_v27 = vpop.eup %3135  ;;  %v1554_v53 = vmul.f32 %v3134_v56, %v1551_v19  ;;  %vm1559_vm15 = vweird.f32 %v3134_v56  ;;  %v1311_v19 = vpack.c.bf16 %v1310_v14, %v1310_v14 }
 0x637   : > { %v1569_v58 = vmul.f32 %v3136_v27, %v1552_v16  ;;  %vm1560_vm1 = vmor %vm1558_vm0, %vm1559_vm15  ;;  %vm1574_vm3 = vweird.f32 %v3136_v27  ;;  %v1123_v16 = vpack.c.bf16 %v1122_v3, %v1122_v3 }
 0x638   : > { %v1555_v52 = vsub.f32 1.0, %v1554_v53  ;;  %vm1575_vm5 = vmor %vm1573_vm4, %vm1574_vm3 }
 0x639   : > { %v1570_v18 = vsub.f32 1.0, %v1569_v58  ;;  %v3011_v58 = vld [vmem:[#allocation6 + $0x1f0] sm:$0xff] }
 0x63a   : > { %v1556_v8 = vmul.f32 %v3134_v56, %v1555_v52  ;;  %v3012_v52 = vld [vmem:[#allocation6 + $0x1f8] sm:$0xff] }
 0x63b   : > { %v1571_v40 = vmul.f32 %v3136_v27, %v1570_v18 }
 0x63c   : > { %v1557_v13 = vadd.f32 %v3134_v56, %v1556_v8  ;;  %v3930_v49 = vpop.f32.mrf.mxu1 }
 0x63d   : > { %v1572_v0 = vadd.f32 %v3136_v27, %v1571_v40 }
 0x63e   : > { %v1561_v35 = vsel %vm1560_vm1, %v3134_v56, %v1557_v13  ;;  %v1498_v56 = vsel %vm1496_vm10, %v3914_v1, %v1497_v41  ;;  %v4006_v13 = vld [vmem:[#allocation13_spill] sm:$0xff] }
 0x63f   : > { %v1566_v57 = vsel %vm1563_vm2, %v1565_v59, %v1561_v35  ;;  %v1576_v24 = vsel %vm1575_vm5, %v3136_v27, %v1572_v0  ;;  %v1499_v27 = vpack.c.bf16 %v1498_v56, %v1498_v56  ;;  %v3068_v0 = vld [vmem:[%s3993_s7] ss:$0 sm:$0xff] }
 0x640   : > { %v1584_v29 = vmul.f32 %v1583_v38, %v1566_v57  ;;  %v1581_v15 = vsel %vm1578_vm6, %v1580_v11, %v1576_v24 }
 0x642   : > { %v1585_v30 = vadd.f32 %v1584_v29, %v4005_v50  ;;  %v3008_v29 = vld [vmem:[#allocation6 + $0x1d8] sm:$0xff] }
 0x644   : > { %3137 = vtanh.f32 %v1585_v30  ;;  %v2267_v61 = vpop.f32.mrf.mxu1  ;;  %v3007_v30 = vld [vmem:[#allocation6 + $0x1d0] sm:$0xff] }
 0x64a   : > { %v3138_v36 = vpop.eup %3137 }
 0x64b   : > { %v1587_v32 = vsub.f32 %v3914_v1, %v3138_v36  ;;  %v4007_v1 = vld [vmem:[#allocation14_spill] sm:$0xff] }
 0x64d   : > { %v1588_v48 = vmul.f32 %v1587_v32, %v1581_v15  ;;  %v2214_v32 = vadd.f32 %v3068_v0, %v3928_v10  ;;  %v3005_v15 = vld [vmem:[#allocation6 + $0x1c0] sm:$0xff] }
 0x64f   : > { %v3941_v17 = vadd.f32 %v3138_v36, %v1588_v48 }
 0x651   : > { %v1597_v23 = vpack.c.bf16 %v3941_v17, %v3941_v17  ;;  %v1591_v4 = vmul.f32 0.22916667, %v3941_v17  ;;  %vm1590_vm11 = vcmp.ge.f32.partialorder %v3941_v17, 0.0 }
 0x653   : > { %1606 = vmatmul.bf16.vlgmr.msra.gmra.mxu2 %v1597_v23  ;;  %1619 = vmatmul.bf16.vlgmr.msra.gmra.mxu3 %v1597_v23  ;;  %v1592_v5 = vsel %vm1590_vm11, %v3941_v17, %v1591_v4 }
 0x654   : > { %1632 = vmatmul.bf16.vlgmr.msra.gmra.mxu0 %v1597_v23  ;;  %2269 = vmatpush.bf16.msra.mxu2 %v2996_v20  ;;  %v1593_v53 = vpack.c.bf16 %v1592_v5, %v1592_v5 }
 0x655   : > { %2282 = vmatpush.bf16.msra.mxu3 %v3004_v33  ;;  %2295 = vmatpush.bf16.msra.mxu0 %v3012_v52 }
 0x658   : > { %2270 = vmatpush.bf16.msra.mxu2 %v2995_v28 }
 0x659   : > { %2283 = vmatpush.bf16.msra.mxu3 %v3003_v31  ;;  %2296 = vmatpush.bf16.msra.mxu0 %v3011_v58 }
 0x65c   : > { %2271 = vmatpush.bf16.msra.mxu2 %v2994_v34 }
 0x65d   : > { %2284 = vmatpush.bf16.msra.mxu3 %v3002_v42  ;;  %2297 = vmatpush.bf16.msra.mxu0 %v3010_v37 }
 0x660   : > { %2272 = vmatpush.bf16.msra.mxu2 %v2993_v55 }
 0x661   : > { %2285 = vmatpush.bf16.msra.mxu3 %v3001_v63  ;;  %2298 = vmatpush.bf16.msra.mxu0 %v3009_v60 }
 0x663   : > { %2225 = vmatmul.bf16.vlgmr.msrb.gmra.mxu2 %v1123_v16  ;;  %2238 = vmatmul.bf16.vlgmr.msrb.gmra.mxu3 %v1217_v21 }
 0x664   : > { %2251 = vmatmul.bf16.vlgmr.msrb.gmra.mxu0 %v1311_v19  ;;  %2273 = vmatpush.bf16.msra.mxu2 %v2992_v22 }
 0x665   : > { %2286 = vmatpush.bf16.msra.mxu3 %v3000_v26  ;;  %2299 = vmatpush.bf16.msra.mxu0 %v3008_v29 }
 0x668   : > { %2274 = vmatpush.bf16.msra.mxu2 %v2991_v46 }
 0x669   : > { %2287 = vmatpush.bf16.msra.mxu3 %v2999_v51  ;;  %2300 = vmatpush.bf16.msra.mxu0 %v3007_v30 }
 0x66c   : > { %2275 = vmatpush.bf16.msra.mxu2 %v2990_v2 }
 0x66d   : > { %2288 = vmatpush.bf16.msra.mxu3 %v2998_v62  ;;  %2301 = vmatpush.bf16.msra.mxu0 %v3006_v12 }
 0x670   : > { %2276 = vmatpush.bf16.msra.mxu2 %v2989_v39  ;;  %v4008_v39 = vld [vmem:[#allocation15_spill] sm:$0xff] }
 0x671   : > { %2289 = vmatpush.bf16.msra.mxu3 %v2997_v6  ;;  %2302 = vmatpush.bf16.msra.mxu0 %v3005_v15 }
 0x673   : > { %2277 = vmatmul.bf16.vlgmr.msra.gmra.mxu2 %v1499_v27 }
 0x674   : > { %2290 = vmatmul.bf16.vlgmr.msra.gmra.mxu3 %v1593_v53 }
 0x6d1   : > { %v1633_v43 = vpop.f32.mrf.mxu0 }
 0x6d2   : > { %v1677_v21 = vadd.f32 %v3935_v25, %v1633_v43 }
 0x6d6   : > { %v1607_v8 = vpop.f32.mrf.mxu2  ;;  %v1620_v44 = vpop.f32.mrf.mxu3 }
 0x6d7   : > { %v1637_v18 = vadd.f32 %v1607_v8, %v4006_v13  ;;  %v1638_v59 = vadd.f32 %v1620_v44, %v4007_v1 }
 0x6d9   : > { %v2645_v38 = vmul.f32 -1.442695, %v1637_v18  ;;  %v2646_v35 = vmul.f32 -1.442695, %v1638_v59  ;;  %v1635_v57 = vpop.f32.mrf.mxu0 }
 0x6db   : > { %3139 = vpow2.f32 %v2645_v38  ;;  %v4009_v38 = vld [vmem:[#allocation10_spill] sm:$0xff] }
 0x6dc   : > { %3141 = vpow2.f32 %v2646_v35  ;;  %vm2308_vm5 = vcmp.lt.s32.totalorder %v4009_v38, 7 }
 0x6de   : > { %v1609_v40 = vpop.f32.mrf.mxu2  ;;  %v1622_v50 = vpop.f32.mrf.mxu3 }
 0x6e1   : > { %v3140_v61 = vpop.eup %3139  ;;  %v2252_v7 = vpop.f32.mrf.mxu0 }
 0x6e2   : > { %v3142_v24 = vpop.eup %3141  ;;  %v1645_v36 = vadd.f32 1.0, %v3140_v61 }
 0x6e3   : > { %v1646_v11 = vadd.f32 1.0, %v3142_v24 }
 0x6e4   : > { %3143 = vrcp.f32 %v1645_v36  ;;  %v1658_v54 = vand.u32 2147483648, %v1645_v36  ;;  %v1656_v10 = vand.u32 2147483647, %v1645_v36  ;;  %vm1652_vm13 = vweird.f32 %v1645_v36 }
 0x6e5   : > { %3145 = vrcp.f32 %v1646_v11  ;;  %v1673_v27 = vand.u32 2147483648, %v1646_v11  ;;  %vm1667_vm1 = vweird.f32 %v1646_v11  ;;  %v1671_v53 = vand.u32 2147483647, %v1646_v11 }
 0x6e6   : > { %v2226_v48 = vpop.f32.mrf.mxu2  ;;  %v2239_v20 = vpop.f32.mrf.mxu3  ;;  %v1659_v22 = vor.u32 1.1754944e-38, %v1658_v54  ;;  %vm1657_vm15 = vcmp.eq.f32.partialorder %v1656_v10, 8.507059e+37 }
 0x6e7   : > { %v2227_v23 = vadd.f32 %v2226_v48, %v2214_v32  ;;  %v1674_v43 = vor.u32 1.1754944e-38, %v1673_v27  ;;  %vm1672_vm3 = vcmp.eq.f32.partialorder %v1671_v53, 8.507059e+37 }
 0x6e9   : > { %v2240_v33 = vadd.f32 %v2239_v20, %v2227_v23  ;;  %v2254_v28 = vpop.f32.mrf.mxu0 }
 0x6ea   : > { %v3144_v31 = vpop.eup %3143 }
 0x6eb   : > { %v3146_v34 = vpop.eup %3145  ;;  %v1648_v42 = vmul.f32 %v3144_v31, %v1645_v36  ;;  %v2253_v47 = vadd.f32 %v2252_v7, %v2240_v33  ;;  %vm1653_vm12 = vweird.f32 %v3144_v31 }
 0x6ec   : > { %v1663_v55 = vmul.f32 %v3146_v34, %v1646_v11  ;;  %vm1654_vm14 = vmor %vm1652_vm13, %vm1653_vm12  ;;  %vm1668_vm0 = vweird.f32 %v3146_v34 }
 0x6ed   : > { %v1649_v45 = vsub.f32 1.0, %v1648_v42  ;;  %v2266_v51 = vadd.f32 %v3930_v49, %v2253_v47  ;;  %vm1669_vm2 = vmor %vm1667_vm1, %vm1668_vm0 }
 0x6ee   : > { %v2228_v63 = vpop.f32.mrf.mxu2  ;;  %v2241_v3 = vpop.f32.mrf.mxu3  ;;  %v1664_v16 = vsub.f32 1.0, %v1663_v55 }
 0x6ef   : > { %v1650_v9 = vmul.f32 %v3144_v31, %v1649_v45 }
 0x6f0   : > { %v1665_v2 = vmul.f32 %v3146_v34, %v1664_v16 }
 0x6f1   : > { %v1651_v14 = vadd.f32 %v3144_v31, %v1650_v9 }
 0x6f2   : > { %v1666_v5 = vadd.f32 %v3146_v34, %v1665_v2 }
 0x6f3   : > { %v1655_v26 = vsel %vm1654_vm14, %v3144_v31, %v1651_v14 }
 0x6f4   : > { %v1660_v19 = vsel %vm1657_vm15, %v1659_v22, %v1655_v26  ;;  %v1670_v52 = vsel %vm1669_vm2, %v3146_v34, %v1666_v5 }
 0x6f5   : > { %v1678_v46 = vmul.f32 %v1677_v21, %v1660_v19  ;;  %v1675_v8 = vsel %vm1672_vm3, %v1674_v43, %v1670_v52 }
 0x6f6   : > { %v2278_v62 = vpop.f32.mrf.mxu2 }
 0x6f7   : > { %v2279_v41 = vadd.f32 %v2278_v62, %v2266_v51  ;;  %v2291_v4 = vpop.f32.mrf.mxu3  ;;  %v1679_v6 = vadd.f32 %v1678_v46, %v4008_v39 }
 0x6f9   : > { %v2292_v56 = vadd.f32 %v2291_v4, %v2279_v41  ;;  %3147 = vtanh.f32 %v1679_v6 }
 0x6fe   : > { %v2280_v25 = vpop.f32.mrf.mxu2 }
 0x6ff   : > { %v3148_v58 = vpop.eup %3147  ;;  %v2293_v37 = vpop.f32.mrf.mxu3 }
 0x700   : > { %v1681_v49 = vsub.f32 %v3941_v17, %v3148_v58 }
 0x702   : > { %v1682_v44 = vmul.f32 %v1681_v49, %v1675_v8 }
 0x704   : > { %v1683_v13 = vadd.f32 %v3148_v58, %v1682_v44 }
 0x706   : > { %vm1684_vm4 = vcmp.ge.f32.partialorder %v1683_v13, 0.0  ;;  %v1685_v18 = vmul.f32 0.22916667, %v1683_v13 }
 0x708   : > { %v1686_v1 = vsel %vm1684_vm4, %v1683_v13, %v1685_v18 }
 0x709   : > { %v1687_v59 = vpack.c.bf16 %v1686_v1, %v1686_v1 }
 0x70b   : > { %2303 = vmatmul.bf16.vlgmr.msra.gmra.mxu0 %v1687_v59 }
 0x788   : > { %v2304_v60 = vpop.f32.mrf.mxu0 }
 0x789   : > { %v2305_v35 = vadd.f32 %v2304_v60, %v2292_v56 }
 0x78b   : > { %v2309_v57 = vsel %vm2308_vm5, %v2305_v35, -1e+30 }
 0x78c   : > { %2310 = vmax.xlane.f32.xlu2 %v2309_v57 }
 0x790   : > { %v2306_v29 = vpop.f32.mrf.mxu0 }
 0x7ff   : > { %v2311_v40 = vpop.xlane.xlu2 %2310 }
 0x800   : > { %v2312_v50 = vsub.f32 %v2309_v57, %v2311_v40 }
 0x802   : > { %v2313_v17 = vmul.f32 1.442695, %v2312_v50 }
 0x804   : > { %3149 = vpow2.f32 %v2313_v17 }
 0x80a   : > { %v3150_v30 = vpop.eup %3149 }
 0x80b   : > { %2315 = vadd.xlane.f32.xlu0 %v3150_v30 }
 0x87e   : > { %v2316_v61 = vpop.xlane.xlu0 %2315 }
 0x87f   : > { %3151 = vrcp.f32 %v2316_v61  ;;  %v2328_v24 = vand.u32 2147483648, %v2316_v61  ;;  %v2326_v11 = vand.u32 2147483647, %v2316_v61  ;;  %vm2322_vm7 = vweird.f32 %v2316_v61 }
 0x881   : > { %v2329_v15 = vor.u32 1.1754944e-38, %v2328_v24  ;;  %vm2327_vm9 = vcmp.eq.f32.partialorder %v2326_v11, 8.507059e+37 }
 0x885   : > { %v3152_v0 = vpop.eup %3151 }
 0x886   : > { %v2318_v7 = vmul.f32 %v3152_v0, %v2316_v61  ;;  %vm2323_vm6 = vweird.f32 %v3152_v0 }
 0x887   : > { %vm2324_vm8 = vmor %vm2322_vm7, %vm2323_vm6 }
 0x888   : > { %v2319_v12 = vsub.f32 1.0, %v2318_v7 }
 0x88a   : > { %v2320_v36 = vmul.f32 %v3152_v0, %v2319_v12 }
 0x88c   : > { %v2321_v32 = vadd.f32 %v3152_v0, %v2320_v36 }
 0x88e   : > { %v2325_v48 = vsel %vm2324_vm8, %v3152_v0, %v2321_v32 }
 0x88f   : > { %v2330_v20 = vsel %vm2327_vm9, %v2329_v15, %v2325_v48 }
 0x890   : > { %v2331_v23 = vmul.f32 %v3150_v30, %v2330_v20 }
 0x892   : > { %2332 = vst [vmem:[%s400_s29] sm:$0xff] %v2331_v23 }
 0x893 PF: > { %p17_p12 = scmp.ge.s32.totalorder %s3318_s9, 4   ;;  %s4010_s27 = smov %s3240_s28 }
 0x894   : > { %s4011_s28 = smov %s3328_s12  ;;  %s4012_s29 = smov %s3318_s9 }
 0x895   :  { %19 = sbr.rel (!%p17_p12) target bundleno = 3 (0x3), region = 134 }
 0x89a   :  { %2352 = vsyncpa [#allocation5], 1 }
 0x89b   :  { %2354 = vsyncpa [#allocation5 + $0x1], 1 }
 0x89c   :  { %2355 = vsyncpa [#allocation7], 1 }

</bundles_post_ra>
